<compile_context>
chip_gen: v5e
topology: v5e:2x2
jax: 0.10.0
libtpu: 0.0.40
codegen_flags: <defaults>
</compile_context>

<pallas_src>
import numpy as np
import jax
import jax.numpy as jnp
from jax import lax
from jax.experimental import pallas as pl
from jax.experimental.pallas import tpu as pltpu

EPS = 1e-5
LANE = 128


def _round_up(x, m):
    return (x + m - 1) // m * m


def _make_kernel(Ho, Wo, Cin, Pm, Po, mm_dtype):
    Ho1, Wo1 = Ho + 1, Wo + 1

    def kernel(x_ref, w1_ref, b1_ref, wd_ref, bd_ref, w5_ref, b5_ref, ep_ref,
               o_ref, scr_x, scr_y):
        # Padded-parity planes {0:EE, 1:EO, 2:OE, 3:OO} are stacked along dim 0
        # of each scratch: plane p occupies rows [p*Ho1, (p+1)*Ho1).
        def pwrite(scr, p, r0, r1, c0, c1, val):
            scr[p * Ho1 + r0:p * Ho1 + r1, c0:c1, :] = val

        def pread(scr, p, r0, c0, nr, nc):
            return scr[p * Ho1 + r0:p * Ho1 + r0 + nr, c0:c0 + nc, :]

        # ---- zero only the 1-pixel halo border strips of each parity plane --
        for scr, C in ((scr_x, Cin), (scr_y, Pm)):
            zr = jnp.zeros((1, Wo1, C), jnp.float32)
            zc = jnp.zeros((Ho1, 1, C), jnp.float32)
            pwrite(scr, 0, 0, 1, 0, Wo1, zr)     # EE: top row
            pwrite(scr, 0, 0, Ho1, 0, 1, zc)     # EE: left col
            pwrite(scr, 1, 0, 1, 0, Wo1, zr)     # EO: top row
            pwrite(scr, 1, 0, Ho1, Wo, Wo1, zc)  # EO: right col
            pwrite(scr, 2, Ho, Ho1, 0, Wo1, zr)  # OE: bottom row
            pwrite(scr, 2, 0, Ho1, 0, 1, zc)     # OE: left col
            pwrite(scr, 3, Ho, Ho1, 0, Wo1, zr)  # OO: bottom row
            pwrite(scr, 3, 0, Ho1, Wo, Wo1, zc)  # OO: right col

        def write_planes(scr, a_ee, a_eo, a_oe, a_oo):
            # original-parity planes land in the padded-parity plane interiors
            pwrite(scr, 0, 1, Ho1, 1, Wo1, a_oo)   # EE interior
            pwrite(scr, 1, 1, Ho1, 0, Wo, a_oe)    # EO interior
            pwrite(scr, 2, 0, Ho, 1, Wo1, a_eo)    # OE interior
            pwrite(scr, 3, 0, Ho, 0, Wo, a_ee)     # OO interior

        def tap(scr, ky, kx):
            # stride-2 window tap (ky,kx) -> contiguous slice of one parity plane
            p = 2 * (ky % 2) + (kx % 2)
            return pread(scr, p, ky // 2, kx // 2, Ho, Wo)

        # ---- load x (parity-de-interleaved by the wrapper) -------------------
        x_all = x_ref[0].astype(jnp.float32)                 # (4*Ho, Wo, Cin)
        x_ee = x_all[0 * Ho:1 * Ho]
        x_eo = x_all[1 * Ho:2 * Ho]
        x_oe = x_all[2 * Ho:3 * Ho]
        x_oo = x_all[3 * Ho:4 * Ho]
        write_planes(scr_x, x_ee, x_eo, x_oe, x_oo)

        # ---- group_conv1 (block-diag) + BN2 + shuffle folded + ReLU ----------
        y1_all = lax.dot_general(x_all.astype(mm_dtype), w1_ref[...],
                                 (((2,), (0,)), ((), ())),
                                 preferred_element_type=jnp.float32)
        y1_all = jnp.maximum(y1_all + b1_ref[...], 0.0)      # (4*Ho, Wo, Pm)
        write_planes(scr_y,
                     y1_all[0 * Ho:1 * Ho], y1_all[1 * Ho:2 * Ho],
                     y1_all[2 * Ho:3 * Ho], y1_all[3 * Ho:4 * Ho])

        # ---- avg_pool2d(x, 3, stride 2, pad 1) directly at Ho x Wo -----------
        # separable: horizontal 3-tap sums per padded-row parity, then vertical
        hs_e = (pread(scr_x, 0, 0, 0, Ho1, Wo) + pread(scr_x, 1, 0, 0, Ho1, Wo)
                + pread(scr_x, 0, 0, 1, Ho1, Wo))            # even padded rows
        hs_o = (pread(scr_x, 2, 0, 0, Ho, Wo) + pread(scr_x, 3, 0, 0, Ho, Wo)
                + pread(scr_x, 2, 0, 1, Ho, Wo))             # odd padded rows
        pool9 = hs_e[0:Ho] + hs_o + hs_e[1:Ho1]              # (Ho, Wo, Cin)
        # embed into output lanes [0, Cin); ep carries the 1/9 (kept f32)
        pool = lax.dot_general(pool9, ep_ref[...], (((2,), (0,)), ((), ())),
                               preferred_element_type=jnp.float32)  # (Ho,Wo,Po)

        # ---- 3x3 depthwise conv (stride 2) + BN4 folded, at Ho x Wo ----------
        acc = tap(scr_y, 0, 0) * wd_ref[0:1, :]
        for k in range(1, 9):
            acc = acc + tap(scr_y, k // 3, k % 3) * wd_ref[k:k + 1, :]
        y3 = acc + bd_ref[...]                               # (Ho, Wo, Pm)

        # ---- group_conv5 (block-diag) + BN6 folded; outputs -> lanes [Cin,Ctot)
        y5 = lax.dot_general(y3.astype(mm_dtype), w5_ref[...],
                             (((2,), (0,)), ((), ())),
                             preferred_element_type=jnp.float32) + b5_ref[...]

        # ---- channel concat (disjoint lanes) + final ReLU, lane-dense store --
        o_ref[0] = jnp.maximum(pool + y5, 0.0).astype(o_ref.dtype)

    return kernel


def shufflenet_unit_b_pallas(x_nchw, params, groups, matmul_dtype=jnp.bfloat16):
    """ShuffleNetUnitB forward. x_nchw: (N, Cin, H, W) f32; params: PyTorch layout."""
    g = groups
    N, Cin, H, W = x_nchw.shape
    # stride-1-to-stride-2 parity split requires even spatial dims
    assert H % 2 == 0 and W % 2 == 0, "even H, W required"
    Ho, Wo = H // 2, W // 2
    Cb = params["w1"].shape[0]           # bottleneck channels
    Cres = params["w5"].shape[0]         # conv-branch output channels
    Ctot = Cin + Cres
    cig, cbg, cresg = Cin // g, Cb // g, Cres // g

    # ---- eval-mode BatchNorm -> per-channel scale/shift ----------------------
    def fold(ga, be, m, v):
        s = ga * lax.rsqrt(v + EPS)
        return s, be - m * s

    s2, t2 = fold(params["g2"], params["be2"], params["m2"], params["v2"])
    s4, t4 = fold(params["g4"], params["be4"], params["m4"], params["v4"])
    s6, t6 = fold(params["g6"], params["be6"], params["m6"], params["v6"])

    # ---- grouped 1x1 convs -> dense block-diagonal matrices ------------------
    W1d = jnp.zeros((Cin, Cb), jnp.float32)
    for gi in range(g):
        blk = params["w1"][gi * cbg:(gi + 1) * cbg, :, 0, 0]        # (cbg, cig)
        W1d = W1d.at[gi * cig:(gi + 1) * cig,
                     gi * cbg:(gi + 1) * cbg].set(blk.T)
    W5d = jnp.zeros((Cb, Cres), jnp.float32)
    for gi in range(g):
        blk = params["w5"][gi * cresg:(gi + 1) * cresg, :, 0, 0]    # (cresg, cbg)
        W5d = W5d.at[gi * cbg:(gi + 1) * cbg,
                     gi * cresg:(gi + 1) * cresg].set(blk.T)

    # ---- fold BN2 + channel shuffle into conv1's output columns --------------
    perm = np.arange(Cb).reshape(g, Cb // g).T.reshape(-1)   # dest d <- src perm[d]
    W1_eff = (W1d * s2[None, :])[:, perm]
    b1_eff = (params["b1"] * s2 + t2)[perm]

    # ---- depthwise weights (already in shuffled channel space) + BN4 ---------
    wd_hwc = jnp.transpose(params["wd"][:, 0, :, :], (1, 2, 0))     # (3, 3, Cb)
    wd_eff = (wd_hwc * s4[None, None, :]).reshape(9, Cb)
    bd_eff = params["bd"] * s4 + t4

    # ---- conv5 + BN6 folded ---------------------------------------------------
    W5_eff = W5d * s6[None, :]
    b5_eff = params["b5"] * s6 + t6

    # ---- lane-dense padded operands (minimal widths) --------------------------
    Pm = _round_up(Cb, LANE)             # bottleneck lane width
    Po = _round_up(Ctot, LANE)           # output lane width (minimal)
    W1_p = jnp.zeros((Cin, Pm), jnp.float32).at[:, :Cb].set(W1_eff).astype(matmul_dtype)
    b1_p = jnp.zeros((1, 1, Pm), jnp.float32).at[0, 0, :Cb].set(b1_eff)
    wd_p = jnp.zeros((9, Pm), jnp.float32).at[:, :Cb].set(wd_eff)
    bd_p = jnp.zeros((1, 1, Pm), jnp.float32).at[0, 0, :Cb].set(bd_eff)
    # conv5 writes straight into output lanes [Cin, Ctot): concat == add
    W5_p = jnp.zeros((Pm, Po), jnp.float32).at[:Cb, Cin:Ctot].set(W5_eff).astype(matmul_dtype)
    b5_p = jnp.zeros((1, 1, Po), jnp.float32).at[0, 0, Cin:Ctot].set(b5_eff)
    # pooled-x embedding into output lanes [0, Cin), 1/9 folded in (kept f32)
    ep = jnp.eye(Cin, Po, dtype=jnp.float32) / 9.0

    # ---- input layout: NCHW -> parity-de-interleaved layout (one XLA pass) ----
    # xd[n, (2*rp+cp)*Ho + i, j, c] = x[n, c, 2i+rp, 2j+cp]
    x_nhwc = jnp.transpose(x_nchw, (0, 2, 3, 1)).astype(jnp.float32)
    xd = x_nhwc.reshape(N, Ho, 2, Wo, 2, Cin).transpose(0, 2, 4, 1, 3, 5)
    xd = xd.reshape(N, 4 * Ho, Wo, Cin)

    # ---- explicit per-step VMEM budget (in/out blocks double-buffered) --------
    def tiled(r, c):
        return _round_up(max(r, 1), 8) * _round_up(max(c, 1), LANE)

    est_bytes = 4 * (2 * 4 * Ho * tiled(Wo, Cin)           # x block (x2 bufs)
                     + 2 * Ho * tiled(Wo, Po)              # out block (x2 bufs)
                     + 4 * (Ho + 1) * tiled(Wo + 1, Cin)   # scr_x
                     + 4 * (Ho + 1) * tiled(Wo + 1, Pm)    # scr_y
                     + 2 * (tiled(Cin, Pm) + tiled(Pm, Po) + tiled(Cin, Po)
                            + tiled(9, Pm) + 3 * tiled(1, max(Pm, Po))))
    vmem_limit = int(min(max(2 * est_bytes, 16 * 2 ** 20), 48 * 2 ** 20))

    kernel = _make_kernel(Ho, Wo, Cin, Pm, Po, matmul_dtype)
    out_full = pl.pallas_call(
        kernel,
        out_shape=jax.ShapeDtypeStruct((N, Ho, Wo, Po), jnp.float32),
        grid_spec=pltpu.PrefetchScalarGridSpec(
            num_scalar_prefetch=0,
            grid=(N,),
            in_specs=[
                pl.BlockSpec((1, 4 * Ho, Wo, Cin), lambda b: (b, 0, 0, 0)),
                pl.BlockSpec((Cin, Pm), lambda b: (0, 0)),
                pl.BlockSpec((1, 1, Pm), lambda b: (0, 0, 0)),
                pl.BlockSpec((9, Pm), lambda b: (0, 0)),
                pl.BlockSpec((1, 1, Pm), lambda b: (0, 0, 0)),
                pl.BlockSpec((Pm, Po), lambda b: (0, 0)),
                pl.BlockSpec((1, 1, Po), lambda b: (0, 0, 0)),
                pl.BlockSpec((Cin, Po), lambda b: (0, 0)),
            ],
            out_specs=pl.BlockSpec((1, Ho, Wo, Po), lambda b: (b, 0, 0, 0)),
            scratch_shapes=[
                pltpu.VMEM((4 * (Ho + 1), Wo + 1, Cin), jnp.float32),  # x parity planes
                pltpu.VMEM((4 * (Ho + 1), Wo + 1, Pm), jnp.float32),   # y1 parity planes
            ],
        ),
        compiler_params=pltpu.CompilerParams(
            dimension_semantics=("parallel",),
            vmem_limit_bytes=vmem_limit),
    )(xd, W1_p, b1_p, wd_p, bd_p, W5_p, b5_p, ep)

    # Trim dead lanes (no-op when Ctot == Po) and return NCHW for the interface.
    out = out_full[..., :Ctot]
    return jnp.transpose(out, (0, 3, 1, 2))


# ------------------------- pure-JAX reference (unfolded) ---------------------
def shufflenet_unit_b_ref(x_nchw, params, groups):
    g = groups
    x = jnp.transpose(x_nchw, (0, 2, 3, 1)).astype(jnp.float32)    # NHWC
    N, H, W, Cin = x.shape
    Cb = params["w1"].shape[0]

    def bn(y, ga, be, m, v):
        return (y - m) * (ga * lax.rsqrt(v + EPS)) + be

    def group_conv1x1(y, w, b):
        Cout, Ci = w.shape[0], y.shape[-1]
        cig, cog = Ci // g, Cout // g
        outs = []
        for gi in range(g):
            wg = w[gi * cog:(gi + 1) * cog, :, 0, 0]               # (cog, cig)
            yg = y[..., gi * cig:(gi + 1) * cig]
            outs.append(jnp.einsum("nhwc,oc->nhwo", yg, wg))
        return jnp.concatenate(outs, axis=-1) + b

    h = group_conv1x1(x, params["w1"], params["b1"])
    h = jnp.maximum(bn(h, params["g2"], params["be2"], params["m2"], params["v2"]), 0.0)
    h = h.reshape(N, H, W, g, Cb // g)
    h = jnp.swapaxes(h, 3, 4).reshape(N, H, W, Cb)                 # channel shuffle
    wd = jnp.transpose(params["wd"][:, 0, :, :], (1, 2, 0))[:, :, None, :]  # HWIO
    h = lax.conv_general_dilated(
        h, wd, window_strides=(2, 2), padding=((1, 1), (1, 1)),
        dimension_numbers=("NHWC", "HWIO", "NHWC"),
        feature_group_count=Cb) + params["bd"]
    h = bn(h, params["g4"], params["be4"], params["m4"], params["v4"])
    h = group_conv1x1(h, params["w5"], params["b5"])
    h = bn(h, params["g6"], params["be6"], params["m6"], params["v6"])
    xp = lax.reduce_window(x, 0.0, lax.add, (1, 3, 3, 1), (1, 2, 2, 1),
                           ((0, 0), (1, 1), (1, 1), (0, 0))) / 9.0
    out = jnp.maximum(jnp.concatenate([xp, h], axis=-1), 0.0)
    return jnp.transpose(out, (0, 3, 1, 2))


if __name__ == "__main__":
    # ShuffleNetUnitB(in_channels=32, out_channels=128, groups=4)
    N, Cin, H, W = 2, 32, 16, 16
    groups = 4
    out_channels = 128
    Cres = out_channels - Cin            # 96
    Cb = Cres // 4                       # 24 bottleneck channels

    key = jax.random.PRNGKey(0)
    ks = jax.random.split(key, 19)

    x = jax.random.normal(ks[0], (N, Cin, H, W), jnp.float32)
    params = dict(
        w1=0.2 * jax.random.normal(ks[1], (Cb, Cin // groups, 1, 1), jnp.float32),
        b1=0.1 * jax.random.normal(ks[2], (Cb,), jnp.float32),
        g2=1.0 + 0.1 * jax.random.normal(ks[3], (Cb,), jnp.float32),
        be2=0.1 * jax.random.normal(ks[4], (Cb,), jnp.float32),
        m2=0.1 * jax.random.normal(ks[5], (Cb,), jnp.float32),
        v2=jax.random.uniform(ks[6], (Cb,), jnp.float32, 0.5, 1.5),
        wd=0.2 * jax.random.normal(ks[7], (Cb, 1, 3, 3), jnp.float32),
        bd=0.1 * jax.random.normal(ks[8], (Cb,), jnp.float32),
        g4=1.0 + 0.1 * jax.random.normal(ks[9], (Cb,), jnp.float32),
        be4=0.1 * jax.random.normal(ks[10], (Cb,), jnp.float32),
        m4=0.1 * jax.random.normal(ks[11], (Cb,), jnp.float32),
        v4=jax.random.uniform(ks[12], (Cb,), jnp.float32, 0.5, 1.5),
        w5=0.2 * jax.random.normal(ks[13], (Cres, Cb // groups, 1, 1), jnp.float32),
        b5=0.1 * jax.random.normal(ks[14], (Cres,), jnp.float32),
        g6=1.0 + 0.1 * jax.random.normal(ks[15], (Cres,), jnp.float32),
        be6=0.1 * jax.random.normal(ks[16], (Cres,), jnp.float32),
        m6=0.1 * jax.random.normal(ks[17], (Cres,), jnp.float32),
        v6=jax.random.uniform(ks[18], (Cres,), jnp.float32, 0.5, 1.5),
    )

    ref = shufflenet_unit_b_ref(x, params, groups)

    # exact path: f32 matmuls, tight tolerance
    out32 = jax.block_until_ready(
        shufflenet_unit_b_pallas(x, params, groups, matmul_dtype=jnp.float32))
    assert out32.shape == (N, Cin + Cres, H // 2, W // 2), out32.shape
    err32 = float(jnp.max(jnp.abs(out32 - ref)))
    assert err32 < 2e-4, err32

    # perf path for v6e/v7x MXUs: bf16 matmul operands, f32 accumulation
    # (depthwise / pooled-x branch stays f32); looser tolerance from bf16
    # operand rounding of the two 1x1 convs.
    outbf = jax.block_until_ready(
        shufflenet_unit_b_pallas(x, params, groups, matmul_dtype=jnp.bfloat16))
    errbf = float(jnp.max(jnp.abs(outbf - ref)))
    assert errbf < 2e-2, errbf

    print("KERNEL_OK")
</pallas_src>

<mosaic_0001>
module attributes {stable_mosaic.version = 11 : i64} {
  func.func @kernel(%arg0: i32, %arg1: memref<1x32x8x32xf32, #tpu.memory_space<vmem>>, %arg2: memref<32x128xf32, #tpu.memory_space<vmem>>, %arg3: memref<1x1x128xf32, #tpu.memory_space<vmem>>, %arg4: memref<9x128xf32, #tpu.memory_space<vmem>>, %arg5: memref<1x1x128xf32, #tpu.memory_space<vmem>>, %arg6: memref<128x128xf32, #tpu.memory_space<vmem>>, %arg7: memref<1x1x128xf32, #tpu.memory_space<vmem>>, %arg8: memref<32x128xf32, #tpu.memory_space<vmem>>, %arg9: memref<1x8x8x128xf32, #tpu.memory_space<vmem>>, %arg10: memref<36x9x32xf32, #tpu.memory_space<vmem>>, %arg11: memref<36x9x128xf32, #tpu.memory_space<vmem>>) attributes {dimension_semantics = [#tpu.dimension_semantics<parallel>], iteration_bounds = array<i64: 2>, scalar_prefetch = 0 : i64, scratch_operands = 2 : i64, tpu.core_type = #tpu.core_type<tc>, window_params = [{transform_indices = @transform_0, window_bounds = array<i64: 1, 32, 8, 32>}, {pipeline_mode = #tpu.pipeline_mode<synchronous>, transform_indices = @transform_1, window_bounds = array<i64: 32, 128>}, {pipeline_mode = #tpu.pipeline_mode<synchronous>, transform_indices = @transform_2, window_bounds = array<i64: 1, 1, 128>}, {pipeline_mode = #tpu.pipeline_mode<synchronous>, transform_indices = @transform_3, window_bounds = array<i64: 9, 128>}, {pipeline_mode = #tpu.pipeline_mode<synchronous>, transform_indices = @transform_4, window_bounds = array<i64: 1, 1, 128>}, {pipeline_mode = #tpu.pipeline_mode<synchronous>, transform_indices = @transform_5, window_bounds = array<i64: 128, 128>}, {pipeline_mode = #tpu.pipeline_mode<synchronous>, transform_indices = @transform_6, window_bounds = array<i64: 1, 1, 128>}, {pipeline_mode = #tpu.pipeline_mode<synchronous>, transform_indices = @transform_7, window_bounds = array<i64: 32, 128>}, {transform_indices = @transform_8, window_bounds = array<i64: 1, 8, 8, 128>}]} {
    %cst = arith.constant 0.000000e+00 : f32
    %0 = vector.broadcast %cst : f32 to vector<1x9x32xf32>
    %cst_0 = arith.constant 0.000000e+00 : f32
    %1 = vector.broadcast %cst_0 : f32 to vector<9x1x32xf32>
    %c0 = arith.constant 0 : index
    %c0_1 = arith.constant 0 : index
    %c0_2 = arith.constant 0 : index
    %2 = vector.load %arg10[%c0, %c0_1, %c0_2] : memref<36x9x32xf32, #tpu.memory_space<vmem>>, vector<1x9x32xf32>
    tpu.vector_store %arg10[%c0, %c0_1, %c0_2], %0 {strides = array<i32>} : memref<36x9x32xf32, #tpu.memory_space<vmem>>, vector<1x9x32xf32>,
    %c0_3 = arith.constant 0 : index
    %c0_4 = arith.constant 0 : index
    %c0_5 = arith.constant 0 : index
    %3 = vector.load %arg10[%c0_3, %c0_4, %c0_5] : memref<36x9x32xf32, #tpu.memory_space<vmem>>, vector<9x1x32xf32>
    tpu.vector_store %arg10[%c0_3, %c0_4, %c0_5], %1 {strides = array<i32>} : memref<36x9x32xf32, #tpu.memory_space<vmem>>, vector<9x1x32xf32>,
    %c9 = arith.constant 9 : index
    %c0_6 = arith.constant 0 : index
    %c0_7 = arith.constant 0 : index
    %4 = vector.load %arg10[%c9, %c0_6, %c0_7] : memref<36x9x32xf32, #tpu.memory_space<vmem>>, vector<1x9x32xf32>
    tpu.vector_store %arg10[%c9, %c0_6, %c0_7], %0 {strides = array<i32>} : memref<36x9x32xf32, #tpu.memory_space<vmem>>, vector<1x9x32xf32>,
    %c9_8 = arith.constant 9 : index
    %c8 = arith.constant 8 : index
    %c0_9 = arith.constant 0 : index
    %5 = vector.load %arg10[%c9_8, %c8, %c0_9] : memref<36x9x32xf32, #tpu.memory_space<vmem>>, vector<9x1x32xf32>
    tpu.vector_store %arg10[%c9_8, %c8, %c0_9], %1 {strides = array<i32>} : memref<36x9x32xf32, #tpu.memory_space<vmem>>, vector<9x1x32xf32>,
    %c26 = arith.constant 26 : index
    %c0_10 = arith.constant 0 : index
    %c0_11 = arith.constant 0 : index
    %6 = vector.load %arg10[%c26, %c0_10, %c0_11] : memref<36x9x32xf32, #tpu.memory_space<vmem>>, vector<1x9x32xf32>
    tpu.vector_store %arg10[%c26, %c0_10, %c0_11], %0 {strides = array<i32>} : memref<36x9x32xf32, #tpu.memory_space<vmem>>, vector<1x9x32xf32>,
    %c18 = arith.constant 18 : index
    %c0_12 = arith.constant 0 : index
    %c0_13 = arith.constant 0 : index
    %7 = vector.load %arg10[%c18, %c0_12, %c0_13] : memref<36x9x32xf32, #tpu.memory_space<vmem>>, vector<9x1x32xf32>
    tpu.vector_store %arg10[%c18, %c0_12, %c0_13], %1 {strides = array<i32>} : memref<36x9x32xf32, #tpu.memory_space<vmem>>, vector<9x1x32xf32>,
    %c35 = arith.constant 35 : index
    %c0_14 = arith.constant 0 : index
    %c0_15 = arith.constant 0 : index
    %8 = vector.load %arg10[%c35, %c0_14, %c0_15] : memref<36x9x32xf32, #tpu.memory_space<vmem>>, vector<1x9x32xf32>
    tpu.vector_store %arg10[%c35, %c0_14, %c0_15], %0 {strides = array<i32>} : memref<36x9x32xf32, #tpu.memory_space<vmem>>, vector<1x9x32xf32>,
    %c27 = arith.constant 27 : index
    %c8_16 = arith.constant 8 : index
    %c0_17 = arith.constant 0 : index
    %9 = vector.load %arg10[%c27, %c8_16, %c0_17] : memref<36x9x32xf32, #tpu.memory_space<vmem>>, vector<9x1x32xf32>
    tpu.vector_store %arg10[%c27, %c8_16, %c0_17], %1 {strides = array<i32>} : memref<36x9x32xf32, #tpu.memory_space<vmem>>, vector<9x1x32xf32>,
    %cst_18 = arith.constant 0.000000e+00 : f32
    %10 = vector.broadcast %cst_18 : f32 to vector<1x9x128xf32>
    %cst_19 = arith.constant 0.000000e+00 : f32
    %11 = vector.broadcast %cst_19 : f32 to vector<9x1x128xf32>
    %c0_20 = arith.constant 0 : index
    %c0_21 = arith.constant 0 : index
    %c0_22 = arith.constant 0 : index
    %12 = vector.load %arg11[%c0_20, %c0_21, %c0_22] : memref<36x9x128xf32, #tpu.memory_space<vmem>>, vector<1x9x128xf32>
    tpu.vector_store %arg11[%c0_20, %c0_21, %c0_22], %10 {strides = array<i32>} : memref<36x9x128xf32, #tpu.memory_space<vmem>>, vector<1x9x128xf32>,
    %c0_23 = arith.constant 0 : index
    %c0_24 = arith.constant 0 : index
    %c0_25 = arith.constant 0 : index
    %13 = vector.load %arg11[%c0_23, %c0_24, %c0_25] : memref<36x9x128xf32, #tpu.memory_space<vmem>>, vector<9x1x128xf32>
    tpu.vector_store %arg11[%c0_23, %c0_24, %c0_25], %11 {strides = array<i32>} : memref<36x9x128xf32, #tpu.memory_space<vmem>>, vector<9x1x128xf32>,
    %c9_26 = arith.constant 9 : index
    %c0_27 = arith.constant 0 : index
    %c0_28 = arith.constant 0 : index
    %14 = vector.load %arg11[%c9_26, %c0_27, %c0_28] : memref<36x9x128xf32, #tpu.memory_space<vmem>>, vector<1x9x128xf32>
    tpu.vector_store %arg11[%c9_26, %c0_27, %c0_28], %10 {strides = array<i32>} : memref<36x9x128xf32, #tpu.memory_space<vmem>>, vector<1x9x128xf32>,
    %c9_29 = arith.constant 9 : index
    %c8_30 = arith.constant 8 : index
    %c0_31 = arith.constant 0 : index
    %15 = vector.load %arg11[%c9_29, %c8_30, %c0_31] : memref<36x9x128xf32, #tpu.memory_space<vmem>>, vector<9x1x128xf32>
    tpu.vector_store %arg11[%c9_29, %c8_30, %c0_31], %11 {strides = array<i32>} : memref<36x9x128xf32, #tpu.memory_space<vmem>>, vector<9x1x128xf32>,
    %c26_32 = arith.constant 26 : index
    %c0_33 = arith.constant 0 : index
    %c0_34 = arith.constant 0 : index
    %16 = vector.load %arg11[%c26_32, %c0_33, %c0_34] : memref<36x9x128xf32, #tpu.memory_space<vmem>>, vector<1x9x128xf32>
    tpu.vector_store %arg11[%c26_32, %c0_33, %c0_34], %10 {strides = array<i32>} : memref<36x9x128xf32, #tpu.memory_space<vmem>>, vector<1x9x128xf32>,
    %c18_35 = arith.constant 18 : index
    %c0_36 = arith.constant 0 : index
    %c0_37 = arith.constant 0 : index
    %17 = vector.load %arg11[%c18_35, %c0_36, %c0_37] : memref<36x9x128xf32, #tpu.memory_space<vmem>>, vector<9x1x128xf32>
    tpu.vector_store %arg11[%c18_35, %c0_36, %c0_37], %11 {strides = array<i32>} : memref<36x9x128xf32, #tpu.memory_space<vmem>>, vector<9x1x128xf32>,
    %c35_38 = arith.constant 35 : index
    %c0_39 = arith.constant 0 : index
    %c0_40 = arith.constant 0 : index
    %18 = vector.load %arg11[%c35_38, %c0_39, %c0_40] : memref<36x9x128xf32, #tpu.memory_space<vmem>>, vector<1x9x128xf32>
    tpu.vector_store %arg11[%c35_38, %c0_39, %c0_40], %10 {strides = array<i32>} : memref<36x9x128xf32, #tpu.memory_space<vmem>>, vector<1x9x128xf32>,
    %c27_41 = arith.constant 27 : index
    %c8_42 = arith.constant 8 : index
    %c0_43 = arith.constant 0 : index
    %19 = vector.load %arg11[%c27_41, %c8_42, %c0_43] : memref<36x9x128xf32, #tpu.memory_space<vmem>>, vector<9x1x128xf32>
    tpu.vector_store %arg11[%c27_41, %c8_42, %c0_43], %11 {strides = array<i32>} : memref<36x9x128xf32, #tpu.memory_space<vmem>>, vector<9x1x128xf32>,
    %c0_44 = arith.constant 0 : index
    %c0_45 = arith.constant 0 : index
    %c0_46 = arith.constant 0 : index
    %c0_47 = arith.constant 0 : index
    %20 = vector.load %arg1[%c0_44, %c0_45, %c0_46, %c0_47] : memref<1x32x8x32xf32, #tpu.memory_space<vmem>>, vector<1x32x8x32xf32>
    %21 = vector.shape_cast %20 : vector<1x32x8x32xf32> to vector<32x8x32xf32>
    %22 = vector.extract_strided_slice %21 {offsets = [0, 0, 0], sizes = [8, 8, 32], strides = [1, 1, 1]} : vector<32x8x32xf32> to vector<8x8x32xf32>
    %23 = vector.extract_strided_slice %21 {offsets = [8, 0, 0], sizes = [8, 8, 32], strides = [1, 1, 1]} : vector<32x8x32xf32> to vector<8x8x32xf32>
    %24 = vector.extract_strided_slice %21 {offsets = [16, 0, 0], sizes = [8, 8, 32], strides = [1, 1, 1]} : vector<32x8x32xf32> to vector<8x8x32xf32>
    %25 = vector.extract_strided_slice %21 {offsets = [24, 0, 0], sizes = [8, 8, 32], strides = [1, 1, 1]} : vector<32x8x32xf32> to vector<8x8x32xf32>
    %c1 = arith.constant 1 : index
    %c1_48 = arith.constant 1 : index
    %c0_49 = arith.constant 0 : index
    %26 = vector.load %arg10[%c1, %c1_48, %c0_49] : memref<36x9x32xf32, #tpu.memory_space<vmem>>, vector<8x8x32xf32>
    tpu.vector_store %arg10[%c1, %c1_48, %c0_49], %25 {strides = array<i32>} : memref<36x9x32xf32, #tpu.memory_space<vmem>>, vector<8x8x32xf32>,
    %c10 = arith.constant 10 : index
    %c0_50 = arith.constant 0 : index
    %c0_51 = arith.constant 0 : index
    %27 = vector.load %arg10[%c10, %c0_50, %c0_51] : memref<36x9x32xf32, #tpu.memory_space<vmem>>, vector<8x8x32xf32>
    tpu.vector_store %arg10[%c10, %c0_50, %c0_51], %24 {strides = array<i32>} : memref<36x9x32xf32, #tpu.memory_space<vmem>>, vector<8x8x32xf32>,
    %c18_52 = arith.constant 18 : index
    %c1_53 = arith.constant 1 : index
    %c0_54 = arith.constant 0 : index
    %28 = vector.load %arg10[%c18_52, %c1_53, %c0_54] : memref<36x9x32xf32, #tpu.memory_space<vmem>>, vector<8x8x32xf32>
    tpu.vector_store %arg10[%c18_52, %c1_53, %c0_54], %23 {strides = array<i32>} : memref<36x9x32xf32, #tpu.memory_space<vmem>>, vector<8x8x32xf32>,
    %c27_55 = arith.constant 27 : index
    %c0_56 = arith.constant 0 : index
    %c0_57 = arith.constant 0 : index
    %29 = vector.load %arg10[%c27_55, %c0_56, %c0_57] : memref<36x9x32xf32, #tpu.memory_space<vmem>>, vector<8x8x32xf32>
    tpu.vector_store %arg10[%c27_55, %c0_56, %c0_57], %22 {strides = array<i32>} : memref<36x9x32xf32, #tpu.memory_space<vmem>>, vector<8x8x32xf32>,
    %c0_58 = arith.constant 0 : index
    %c0_59 = arith.constant 0 : index
    %30 = vector.load %arg2[%c0_58, %c0_59] : memref<32x128xf32, #tpu.memory_space<vmem>>, vector<32x128xf32>
    %cst_60 = arith.constant dense<0.000000e+00> : vector<32x8x128xf32>
    %31 = tpu.matmul %21, %30, %cst_60 {dimension_numbers = #tpu.dot_dimension_numbers<[2], [0], [0, 1], [1], [0, 0, 0, 1, 1, 1], [], []>} : vector<32x8x32xf32>, vector<32x128xf32>, vector<32x8x128xf32> -> vector<32x8x128xf32>
    %c0_61 = arith.constant 0 : index
    %c0_62 = arith.constant 0 : index
    %c0_63 = arith.constant 0 : index
    %32 = vector.load %arg3[%c0_61, %c0_62, %c0_63] : memref<1x1x128xf32, #tpu.memory_space<vmem>>, vector<1x1x128xf32>
    %33 = vector.broadcast %32 : vector<1x1x128xf32> to vector<32x8x128xf32>
    %34 = arith.addf %31, %33 : vector<32x8x128xf32>
    %cst_64 = arith.constant 0.000000e+00 : f32
    %35 = vector.broadcast %cst_64 : f32 to vector<32x8x128xf32>
    %36 = arith.maximumf %34, %35 : vector<32x8x128xf32>
    %37 = vector.extract_strided_slice %36 {offsets = [0, 0, 0], sizes = [8, 8, 128], strides = [1, 1, 1]} : vector<32x8x128xf32> to vector<8x8x128xf32>
    %38 = vector.extract_strided_slice %36 {offsets = [8, 0, 0], sizes = [8, 8, 128], strides = [1, 1, 1]} : vector<32x8x128xf32> to vector<8x8x128xf32>
    %39 = vector.extract_strided_slice %36 {offsets = [16, 0, 0], sizes = [8, 8, 128], strides = [1, 1, 1]} : vector<32x8x128xf32> to vector<8x8x128xf32>
    %40 = vector.extract_strided_slice %36 {offsets = [24, 0, 0], sizes = [8, 8, 128], strides = [1, 1, 1]} : vector<32x8x128xf32> to vector<8x8x128xf32>
    %c1_65 = arith.constant 1 : index
    %c1_66 = arith.constant 1 : index
    %c0_67 = arith.constant 0 : index
    %41 = vector.load %arg11[%c1_65, %c1_66, %c0_67] : memref<36x9x128xf32, #tpu.memory_space<vmem>>, vector<8x8x128xf32>
    tpu.vector_store %arg11[%c1_65, %c1_66, %c0_67], %40 {strides = array<i32>} : memref<36x9x128xf32, #tpu.memory_space<vmem>>, vector<8x8x128xf32>,
    %c10_68 = arith.constant 10 : index
    %c0_69 = arith.constant 0 : index
    %c0_70 = arith.constant 0 : index
    %42 = vector.load %arg11[%c10_68, %c0_69, %c0_70] : memref<36x9x128xf32, #tpu.memory_space<vmem>>, vector<8x8x128xf32>
    tpu.vector_store %arg11[%c10_68, %c0_69, %c0_70], %39 {strides = array<i32>} : memref<36x9x128xf32, #tpu.memory_space<vmem>>, vector<8x8x128xf32>,
    %c18_71 = arith.constant 18 : index
    %c1_72 = arith.constant 1 : index
    %c0_73 = arith.constant 0 : index
    %43 = vector.load %arg11[%c18_71, %c1_72, %c0_73] : memref<36x9x128xf32, #tpu.memory_space<vmem>>, vector<8x8x128xf32>
    tpu.vector_store %arg11[%c18_71, %c1_72, %c0_73], %38 {strides = array<i32>} : memref<36x9x128xf32, #tpu.memory_space<vmem>>, vector<8x8x128xf32>,
    %c27_74 = arith.constant 27 : index
    %c0_75 = arith.constant 0 : index
    %c0_76 = arith.constant 0 : index
    %44 = vector.load %arg11[%c27_74, %c0_75, %c0_76] : memref<36x9x128xf32, #tpu.memory_space<vmem>>, vector<8x8x128xf32>
    tpu.vector_store %arg11[%c27_74, %c0_75, %c0_76], %37 {strides = array<i32>} : memref<36x9x128xf32, #tpu.memory_space<vmem>>, vector<8x8x128xf32>,
    %c0_77 = arith.constant 0 : index
    %c0_78 = arith.constant 0 : index
    %c0_79 = arith.constant 0 : index
    %45 = vector.load %arg10[%c0_77, %c0_78, %c0_79] : memref<36x9x32xf32, #tpu.memory_space<vmem>>, vector<9x8x32xf32>
    %c9_80 = arith.constant 9 : index
    %c0_81 = arith.constant 0 : index
    %c0_82 = arith.constant 0 : index
    %46 = vector.load %arg10[%c9_80, %c0_81, %c0_82] : memref<36x9x32xf32, #tpu.memory_space<vmem>>, vector<9x8x32xf32>
    %47 = arith.addf %45, %46 : vector<9x8x32xf32>
    %c0_83 = arith.constant 0 : index
    %c1_84 = arith.constant 1 : index
    %c0_85 = arith.constant 0 : index
    %48 = vector.load %arg10[%c0_83, %c1_84, %c0_85] : memref<36x9x32xf32, #tpu.memory_space<vmem>>, vector<9x8x32xf32>
    %49 = arith.addf %47, %48 : vector<9x8x32xf32>
    %c18_86 = arith.constant 18 : index
    %c0_87 = arith.constant 0 : index
    %c0_88 = arith.constant 0 : index
    %50 = vector.load %arg10[%c18_86, %c0_87, %c0_88] : memref<36x9x32xf32, #tpu.memory_space<vmem>>, vector<8x8x32xf32>
    %c27_89 = arith.constant 27 : index
    %c0_90 = arith.constant 0 : index
    %c0_91 = arith.constant 0 : index
    %51 = vector.load %arg10[%c27_89, %c0_90, %c0_91] : memref<36x9x32xf32, #tpu.memory_space<vmem>>, vector<8x8x32xf32>
    %52 = arith.addf %50, %51 : vector<8x8x32xf32>
    %c18_92 = arith.constant 18 : index
    %c1_93 = arith.constant 1 : index
    %c0_94 = arith.constant 0 : index
    %53 = vector.load %arg10[%c18_92, %c1_93, %c0_94] : memref<36x9x32xf32, #tpu.memory_space<vmem>>, vector<8x8x32xf32>
    %54 = arith.addf %52, %53 : vector<8x8x32xf32>
    %55 = vector.extract_strided_slice %49 {offsets = [0, 0, 0], sizes = [8, 8, 32], strides = [1, 1, 1]} : vector<9x8x32xf32> to vector<8x8x32xf32>
    %56 = arith.addf %55, %54 : vector<8x8x32xf32>
    %57 = vector.extract_strided_slice %49 {offsets = [1, 0, 0], sizes = [8, 8, 32], strides = [1, 1, 1]} : vector<9x8x32xf32> to vector<8x8x32xf32>
    %58 = arith.addf %56, %57 : vector<8x8x32xf32>
    %c0_95 = arith.constant 0 : index
    %c0_96 = arith.constant 0 : index
    %59 = vector.load %arg8[%c0_95, %c0_96] : memref<32x128xf32, #tpu.memory_space<vmem>>, vector<32x128xf32>
    %cst_97 = arith.constant dense<0.000000e+00> : vector<8x8x128xf32>
    %60 = tpu.matmul %58, %59, %cst_97 {dimension_numbers = #tpu.dot_dimension_numbers<[2], [0], [0, 1], [1], [0, 0, 0, 1, 1, 1], [], []>} : vector<8x8x32xf32>, vector<32x128xf32>, vector<8x8x128xf32> -> vector<8x8x128xf32>
    %c0_98 = arith.constant 0 : index
    %c0_99 = arith.constant 0 : index
    %c0_100 = arith.constant 0 : index
    %61 = vector.load %arg11[%c0_98, %c0_99, %c0_100] : memref<36x9x128xf32, #tpu.memory_space<vmem>>, vector<8x8x128xf32>
    %c0_101 = arith.constant 0 : index
    %c0_102 = arith.constant 0 : index
    %62 = vector.load %arg4[%c0_101, %c0_102] : memref<9x128xf32, #tpu.memory_space<vmem>>, vector<1x128xf32>
    %63 = vector.shape_cast %62 : vector<1x128xf32> to vector<1x1x128xf32>
    %64 = vector.broadcast %63 : vector<1x1x128xf32> to vector<8x8x128xf32>
    %65 = arith.mulf %61, %64 : vector<8x8x128xf32>
    %c9_103 = arith.constant 9 : index
    %c0_104 = arith.constant 0 : index
    %c0_105 = arith.constant 0 : index
    %66 = vector.load %arg11[%c9_103, %c0_104, %c0_105] : memref<36x9x128xf32, #tpu.memory_space<vmem>>, vector<8x8x128xf32>
    %c1_106 = arith.constant 1 : index
    %c0_107 = arith.constant 0 : index
    %67 = vector.load %arg4[%c1_106, %c0_107] : memref<9x128xf32, #tpu.memory_space<vmem>>, vector<1x128xf32>
    %68 = vector.shape_cast %67 : vector<1x128xf32> to vector<1x1x128xf32>
    %69 = vector.broadcast %68 : vector<1x1x128xf32> to vector<8x8x128xf32>
    %70 = arith.mulf %66, %69 : vector<8x8x128xf32>
    %71 = arith.addf %65, %70 : vector<8x8x128xf32>
    %c0_108 = arith.constant 0 : index
    %c1_109 = arith.constant 1 : index
    %c0_110 = arith.constant 0 : index
    %72 = vector.load %arg11[%c0_108, %c1_109, %c0_110] : memref<36x9x128xf32, #tpu.memory_space<vmem>>, vector<8x8x128xf32>
    %c2 = arith.constant 2 : index
    %c0_111 = arith.constant 0 : index
    %73 = vector.load %arg4[%c2, %c0_111] : memref<9x128xf32, #tpu.memory_space<vmem>>, vector<1x128xf32>
    %74 = vector.shape_cast %73 : vector<1x128xf32> to vector<1x1x128xf32>
    %75 = vector.broadcast %74 : vector<1x1x128xf32> to vector<8x8x128xf32>
    %76 = arith.mulf %72, %75 : vector<8x8x128xf32>
    %77 = arith.addf %71, %76 : vector<8x8x128xf32>
    %c18_112 = arith.constant 18 : index
    %c0_113 = arith.constant 0 : index
    %c0_114 = arith.constant 0 : index
    %78 = vector.load %arg11[%c18_112, %c0_113, %c0_114] : memref<36x9x128xf32, #tpu.memory_space<vmem>>, vector<8x8x128xf32>
    %c3 = arith.constant 3 : index
    %c0_115 = arith.constant 0 : index
    %79 = vector.load %arg4[%c3, %c0_115] : memref<9x128xf32, #tpu.memory_space<vmem>>, vector<1x128xf32>
    %80 = vector.shape_cast %79 : vector<1x128xf32> to vector<1x1x128xf32>
    %81 = vector.broadcast %80 : vector<1x1x128xf32> to vector<8x8x128xf32>
    %82 = arith.mulf %78, %81 : vector<8x8x128xf32>
    %83 = arith.addf %77, %82 : vector<8x8x128xf32>
    %c27_116 = arith.constant 27 : index
    %c0_117 = arith.constant 0 : index
    %c0_118 = arith.constant 0 : index
    %84 = vector.load %arg11[%c27_116, %c0_117, %c0_118] : memref<36x9x128xf32, #tpu.memory_space<vmem>>, vector<8x8x128xf32>
    %c4 = arith.constant 4 : index
    %c0_119 = arith.constant 0 : index
    %85 = vector.load %arg4[%c4, %c0_119] : memref<9x128xf32, #tpu.memory_space<vmem>>, vector<1x128xf32>
    %86 = vector.shape_cast %85 : vector<1x128xf32> to vector<1x1x128xf32>
    %87 = vector.broadcast %86 : vector<1x1x128xf32> to vector<8x8x128xf32>
    %88 = arith.mulf %84, %87 : vector<8x8x128xf32>
    %89 = arith.addf %83, %88 : vector<8x8x128xf32>
    %c18_120 = arith.constant 18 : index
    %c1_121 = arith.constant 1 : index
    %c0_122 = arith.constant 0 : index
    %90 = vector.load %arg11[%c18_120, %c1_121, %c0_122] : memref<36x9x128xf32, #tpu.memory_space<vmem>>, vector<8x8x128xf32>
    %c5 = arith.constant 5 : index
    %c0_123 = arith.constant 0 : index
    %91 = vector.load %arg4[%c5, %c0_123] : memref<9x128xf32, #tpu.memory_space<vmem>>, vector<1x128xf32>
    %92 = vector.shape_cast %91 : vector<1x128xf32> to vector<1x1x128xf32>
    %93 = vector.broadcast %92 : vector<1x1x128xf32> to vector<8x8x128xf32>
    %94 = arith.mulf %90, %93 : vector<8x8x128xf32>
    %95 = arith.addf %89, %94 : vector<8x8x128xf32>
    %c1_124 = arith.constant 1 : index
    %c0_125 = arith.constant 0 : index
    %c0_126 = arith.constant 0 : index
    %96 = vector.load %arg11[%c1_124, %c0_125, %c0_126] : memref<36x9x128xf32, #tpu.memory_space<vmem>>, vector<8x8x128xf32>
    %c6 = arith.constant 6 : index
    %c0_127 = arith.constant 0 : index
    %97 = vector.load %arg4[%c6, %c0_127] : memref<9x128xf32, #tpu.memory_space<vmem>>, vector<1x128xf32>
    %98 = vector.shape_cast %97 : vector<1x128xf32> to vector<1x1x128xf32>
    %99 = vector.broadcast %98 : vector<1x1x128xf32> to vector<8x8x128xf32>
    %100 = arith.mulf %96, %99 : vector<8x8x128xf32>
    %101 = arith.addf %95, %100 : vector<8x8x128xf32>
    %c10_128 = arith.constant 10 : index
    %c0_129 = arith.constant 0 : index
    %c0_130 = arith.constant 0 : index
    %102 = vector.load %arg11[%c10_128, %c0_129, %c0_130] : memref<36x9x128xf32, #tpu.memory_space<vmem>>, vector<8x8x128xf32>
    %c7 = arith.constant 7 : index
    %c0_131 = arith.constant 0 : index
    %103 = vector.load %arg4[%c7, %c0_131] : memref<9x128xf32, #tpu.memory_space<vmem>>, vector<1x128xf32>
    %104 = vector.shape_cast %103 : vector<1x128xf32> to vector<1x1x128xf32>
    %105 = vector.broadcast %104 : vector<1x1x128xf32> to vector<8x8x128xf32>
    %106 = arith.mulf %102, %105 : vector<8x8x128xf32>
    %107 = arith.addf %101, %106 : vector<8x8x128xf32>
    %c1_132 = arith.constant 1 : index
    %c1_133 = arith.constant 1 : index
    %c0_134 = arith.constant 0 : index
    %108 = vector.load %arg11[%c1_132, %c1_133, %c0_134] : memref<36x9x128xf32, #tpu.memory_space<vmem>>, vector<8x8x128xf32>
    %c8_135 = arith.constant 8 : index
    %c0_136 = arith.constant 0 : index
    %109 = vector.load %arg4[%c8_135, %c0_136] : memref<9x128xf32, #tpu.memory_space<vmem>>, vector<1x128xf32>
    %110 = vector.shape_cast %109 : vector<1x128xf32> to vector<1x1x128xf32>
    %111 = vector.broadcast %110 : vector<1x1x128xf32> to vector<8x8x128xf32>
    %112 = arith.mulf %108, %111 : vector<8x8x128xf32>
    %113 = arith.addf %107, %112 : vector<8x8x128xf32>
    %c0_137 = arith.constant 0 : index
    %c0_138 = arith.constant 0 : index
    %c0_139 = arith.constant 0 : index
    %114 = vector.load %arg5[%c0_137, %c0_138, %c0_139] : memref<1x1x128xf32, #tpu.memory_space<vmem>>, vector<1x1x128xf32>
    %115 = vector.broadcast %114 : vector<1x1x128xf32> to vector<8x8x128xf32>
    %116 = arith.addf %113, %115 : vector<8x8x128xf32>
    %c0_140 = arith.constant 0 : index
    %c0_141 = arith.constant 0 : index
    %117 = vector.load %arg6[%c0_140, %c0_141] : memref<128x128xf32, #tpu.memory_space<vmem>>, vector<128x128xf32>
    %cst_142 = arith.constant dense<0.000000e+00> : vector<8x8x128xf32>
    %118 = tpu.matmul %116, %117, %cst_142 {dimension_numbers = #tpu.dot_dimension_numbers<[2], [0], [0, 1], [1], [0, 0, 0, 1, 1, 1], [], []>} : vector<8x8x128xf32>, vector<128x128xf32>, vector<8x8x128xf32> -> vector<8x8x128xf32>
    %c0_143 = arith.constant 0 : index
    %c0_144 = arith.constant 0 : index
    %c0_145 = arith.constant 0 : index
    %119 = vector.load %arg7[%c0_143, %c0_144, %c0_145] : memref<1x1x128xf32, #tpu.memory_space<vmem>>, vector<1x1x128xf32>
    %120 = vector.broadcast %119 : vector<1x1x128xf32> to vector<8x8x128xf32>
    %121 = arith.addf %118, %120 : vector<8x8x128xf32>
    %122 = arith.addf %60, %121 : vector<8x8x128xf32>
    %cst_146 = arith.constant 0.000000e+00 : f32
    %123 = vector.broadcast %cst_146 : f32 to vector<8x8x128xf32>
    %124 = arith.maximumf %122, %123 : vector<8x8x128xf32>
    %c0_147 = arith.constant 0 : index
    %c0_148 = arith.constant 0 : index
    %c0_149 = arith.constant 0 : index
    %c0_150 = arith.constant 0 : index
    %125 = vector.load %arg9[%c0_147, %c0_148, %c0_149, %c0_150] : memref<1x8x8x128xf32, #tpu.memory_space<vmem>>, vector<1x8x8x128xf32>
    %126 = vector.shape_cast %125 : vector<1x8x8x128xf32> to vector<8x8x128xf32>
    %127 = vector.shape_cast %124 : vector<8x8x128xf32> to vector<1x8x8x128xf32>
    tpu.vector_store %arg9[%c0_147, %c0_148, %c0_149, %c0_150], %127 {strides = array<i32>} : memref<1x8x8x128xf32, #tpu.memory_space<vmem>>, vector<1x8x8x128xf32>,
    return
  }
  func.func @transform_0(%arg0: i32) -> (i32, i32, i32, i32) {
    %c0_i32 = arith.constant 0 : i32
    %c0_i32_0 = arith.constant 0 : i32
    %c0_i32_1 = arith.constant 0 : i32
    %c0_i32_2 = arith.constant 0 : i32
    return %arg0, %c0_i32, %c0_i32_0, %c0_i32_1 : i32, i32, i32, i32
  }
  func.func @transform_1(%arg0: i32) -> (i32, i32) {
    %c0_i32 = arith.constant 0 : i32
    %c0_i32_0 = arith.constant 0 : i32
    %c0_i32_1 = arith.constant 0 : i32
    return %c0_i32, %c0_i32_0 : i32, i32
  }
  func.func @transform_2(%arg0: i32) -> (i32, i32, i32) {
    %c0_i32 = arith.constant 0 : i32
    %c0_i32_0 = arith.constant 0 : i32
    %c0_i32_1 = arith.constant 0 : i32
    %c0_i32_2 = arith.constant 0 : i32
    return %c0_i32, %c0_i32_0, %c0_i32_1 : i32, i32, i32
  }
  func.func @transform_3(%arg0: i32) -> (i32, i32) {
    %c0_i32 = arith.constant 0 : i32
    %c0_i32_0 = arith.constant 0 : i32
    %c0_i32_1 = arith.constant 0 : i32
    return %c0_i32, %c0_i32_0 : i32, i32
  }
  func.func @transform_4(%arg0: i32) -> (i32, i32, i32) {
    %c0_i32 = arith.constant 0 : i32
    %c0_i32_0 = arith.constant 0 : i32
    %c0_i32_1 = arith.constant 0 : i32
    %c0_i32_2 = arith.constant 0 : i32
    return %c0_i32, %c0_i32_0, %c0_i32_1 : i32, i32, i32
  }
  func.func @transform_5(%arg0: i32) -> (i32, i32) {
    %c0_i32 = arith.constant 0 : i32
    %c0_i32_0 = arith.constant 0 : i32
    %c0_i32_1 = arith.constant 0 : i32
    return %c0_i32, %c0_i32_0 : i32, i32
  }
  func.func @transform_6(%arg0: i32) -> (i32, i32, i32) {
    %c0_i32 = arith.constant 0 : i32
    %c0_i32_0 = arith.constant 0 : i32
    %c0_i32_1 = arith.constant 0 : i32
    %c0_i32_2 = arith.constant 0 : i32
    return %c0_i32, %c0_i32_0, %c0_i32_1 : i32, i32, i32
  }
  func.func @transform_7(%arg0: i32) -> (i32, i32) {
    %c0_i32 = arith.constant 0 : i32
    %c0_i32_0 = arith.constant 0 : i32
    %c0_i32_1 = arith.constant 0 : i32
    return %c0_i32, %c0_i32_0 : i32, i32
  }
  func.func @transform_8(%arg0: i32) -> (i32, i32, i32, i32) {
    %c0_i32 = arith.constant 0 : i32
    %c0_i32_0 = arith.constant 0 : i32
    %c0_i32_1 = arith.constant 0 : i32
    %c0_i32_2 = arith.constant 0 : i32
    return %arg0, %c0_i32, %c0_i32_0, %c0_i32_1 : i32, i32, i32, i32
  }
}

</mosaic_0001>

<bundles_post_ra>
// kernel: tpu_custom_call.1
= control target key start
LH: loop header
LB: loop body
LE: loop exit
PB: predicated region body
PF: predicated region fallthrough
CT: control target
= control target key end

     0   :  { %s2631_s0 = inlined_call_operand.hbm [shape: f32[2,32,8,32], index: 0, kind: input, shape index: {}]   ;;  %s2632_s1 = inlined_call_operand.hbm [shape: f32[32,128], index: 1, kind: input, shape index: {}]   ;;  %s2633_s2 = inlined_call_operand.vmem [shape: f32[1,1,128], index: 2, kind: input, shape index: {}]   ;;  %s2634_s3 = inlined_call_operand.hbm [shape: f32[9,128], index: 3, kind: input, shape index: {}]   ;;  %s2635_s4 = inlined_call_operand.vmem [shape: f32[1,1,128], index: 4, kind: input, shape index: {}]   ;;  %s2636_s5 = inlined_call_operand.hbm [shape: f32[128,128], index: 5, kind: input, shape index: {}]   ;;  %s2637_s6 = inlined_call_operand.vmem [shape: f32[1,1,128], index: 6, kind: input, shape index: {}]   ;;  %s2638_s7 = inlined_call_operand.hbm [shape: f32[32,128], index: 7, kind: input, shape index: {}]   ;;  %s2639_s8 = inlined_call_operand.hbm [shape: f32[2,8,8,128], index: 8, kind: output, shape index: {}]  }
   0x1   :  { %2648 = sst [smem:[#allocation18_spill]] %s2632_s1 }
   0x2   :  { %2649 = sst [smem:[#allocation19_spill]] %s2634_s3 }
   0x3   :  { %13 = vsyncpa [#allocation5], 0 }
   0x4   :  { %15 = vsyncpa [#allocation5 + $0x1], 0 }
   0x5   :  { %16 = vsyncpa [#allocation8], 0 }
   0x6   :  { %17 = vsyncpa [#allocation11], 0 }
   0x7   :  { %18 = vsyncpa [#allocation6], 0 }
   0x8   :  { %20 = vsyncpa [#allocation6 + $0x1], 0  ;;  %s1913_s27 = smov 0   ;;  %s1915_s28 = smov 0  }
   0x9   :  { %s1917_s29 = smov 0   ;;  %s1919_s30 = smov 0  }
   0xa LB: > { %s1934_s9 = sadd.s32 4294967295, %s1857_s30   ;;  %s1453_s10 = sadd.s32 4294967294, %s1857_s30   ;;  %s1857_s30 = sphi %s1919_s30, %s2676_s30   ;;  %s1853_s29 = sphi %s1917_s29, %s2675_s29   ;;  %s1849_s28 = sphi %s1915_s28, %s2674_s28   ;;  %s1845_s27 = sphi %s1913_s27, %s2673_s27  }
   0xb   : > { %p46_p0 = scmp.ne.s32.totalorder %s1849_s28, %s1845_s27  ;;  %p47_p1 = scmp.eq.s32.totalorder %s1934_s9, 0 }
   0xc   : > { %p217_p2 = scmp.eq.s32.totalorder %s1934_s9, 1  ;;  %p223_p3 = scmp.eq.s32.totalorder %s1453_s10, 1 }
   0xd   : > { %p1943_p4 = por %p47_p1, %p46_p0  ;;  %p1454_p5 = scmp.ge.s32.totalorder %s1857_s30, 1 }
   0xe   : > { %p1948_p6 = por %p223_p3, %p46_p0  ;;  %p230_p7 = scmp.lt.s32.totalorder %s1857_s30, 3 }
   0xf   : > { %s2652_s1 = sld [smem:[#allocation18_spill]]  ;;  %s1859_s17 = smov [#allocation7]  }
  0x10   : > { %p1956_p8 = pnand %p1454_p5, %p230_p7  ;;  %s243_s18 = sshll.u32 %s1859_s17, 4  ;;  %s244_s18 = int_to_ptr.vmem [resolvable:$true] %s243_s18 }
  0x11   : > { %s275_s22 = sshll.u32 %s2636_s5, 4  ;;  %s2640_s23 = smov 128   ;;  %s276_s22 = int_to_ptr.hbm [resolvable:$true] %s275_s22 }
  0x12   : > { %p1549_p9 = pneg %p1956_p8  ;;  %s2641_s24 = smov 8  }
  0x13   : > { %s1862_s25 = smov [#allocation10]   ;;  %s2655_s3 = sld [smem:[#allocation19_spill]] }
  0x14   : > { %p1964_p10 = pnand %p1549_p9, %p47_p1  ;;  %s277_s26 = sshll.u32 %s1862_s25, 4  ;;  %s278_s26 = int_to_ptr.vmem [resolvable:$true] %s277_s26 }
  0x15   : > { %s241_s15 = sshll.u32 %s2652_s1, 4  ;;  %s1863_s20 = smov [#allocation9]   ;;  %s242_s15 = int_to_ptr.hbm [resolvable:$true] %s241_s15 }
  0x16   : > { %1552 = dma.hbm_to_vmem [thread:$0]  (!%p1964_p10), %s242_s15, 512, %s244_s18, [#allocation8], %s2640_s23, %s2640_s23, %s2641_s24  }
  0x17   : > { %1558 = dma.hbm_to_vmem [thread:$0]  (!%p1964_p10), %s276_s22, 2048, %s278_s26, [#allocation11], %s2640_s23, %s2640_s23, %s2641_s24  }
  0x18   : > { %s292_s18 = sshll.u32 %s2638_s7, 4  ;;  %s260_s21 = sshll.u32 %s1863_s20, 4  ;;  %s293_s18 = int_to_ptr.hbm [resolvable:$true] %s292_s18  ;;  %s261_s21 = int_to_ptr.vmem [resolvable:$true] %s260_s21 }
  0x19   : > { %s258_s14 = sshll.u32 %s2655_s3, 4  ;;  %s1864_s25 = smov [#allocation12]   ;;  %s259_s14 = int_to_ptr.hbm [resolvable:$true] %s258_s14 }
  0x1a   : > { %1555 = dma.hbm_to_vmem [thread:$0]  (!%p1964_p10), %s259_s14, 256, %s261_s21, [#allocation8], %s2640_s23, %s2640_s23, %s2641_s24  }
  0x1b   : > { %s294_s22 = sshll.u32 %s1864_s25, 4  ;;  %s1999_s26 = sadd.s32 1, %s1857_s30   ;;  %s295_s22 = int_to_ptr.vmem [resolvable:$true] %s294_s22 }
  0x1c   : > { %1561 = dma.hbm_to_vmem [thread:$0]  (!%p1964_p10), %s293_s18, 512, %s295_s22, [#allocation11], %s2640_s23, %s2640_s23, %s2641_s24  }
  0x1d   : > { %s33_s10 = sadd.s32 1, %s1853_s29  ;;  %s30_s13 = ssub.s32 %s1857_s30, %s1999_s26 }
  0x1e   : > { %p40_p12 = scmp.ne.s32.totalorder %s1853_s29, %s1849_s28  ;;  %p31_p13 = scmp.eq.s32.totalorder %s30_s13, 0 }
  0x1f   : > { %p41_p0 = scmp.eq.s32.totalorder %s1857_s30, 0  ;;  %p1574_p5 = scmp.lt.s32.totalorder %s1857_s30, 2 }
  0x20   : > { %p2009_p3 = por %p217_p2, %p40_p12  ;;  %s308_s19 = sand.u32 1, %s1853_s29  }
  0x21   : > { %s2015_s15 = scalar_select %p31_p13, %s1853_s29, %s33_s10  }
  0x22   : > { %p42_p7 = por %p41_p0, %p40_p12  ;;  %s1460_s17 = sshll.u32 %s308_s19, 8 }
  0x23   : > { %s1515_s18 = sshll.u32 %s1857_s30, 8  ;;  %s312_s22 = scalar_lea.vmem [#allocation4], %s1460_s17 }
  0x24   : > { %s317_s25 = scalar_lea.hbm %s2631_s0, %s1515_s18  ;;  %s320_s23 = sshll.u32 %s312_s22, 4  ;;  %s321_s23 = int_to_ptr.vmem [resolvable:$true] %s320_s23 }
  0x25   : > { %s318_s13 = sshll.u32 %s317_s25, 4  ;;  %p2022_p2 = pnand %p1574_p5, %p42_p7  ;;  %s319_s13 = int_to_ptr.hbm [resolvable:$true] %s318_s13 }
  0x26   : > { %s309_s10 = scalar_lea.sflag [#allocation5], %s308_s19  ;;  %s1753_s1 = sshra.s32 %s319_s13, 4  ;;  %s1754_s1 = int_to_ptr.hbm [resolvable:$true] %s1753_s1 }
  0x27   : > { %s1755_s3 = scalar_lea.hbm %s1754_s1, 256  ;;  %p1757_p10 = pneg %p2022_p2 }
  0x28   : > { %p1756_p9 = scmp.ne.s32.totalorder %s1754_s1, %s1755_s3  ;;  %s1760_s20 = scalar_lea.hbm %s2631_s0, 512 }
  0x29   : > { %p1761_p0 = scmp.lt.s32.totalorder %s1754_s1, %s2631_s0  ;;  %p1762_p5 = scmp.lt.s32.totalorder %s1760_s20, %s1755_s3 }
  0x2a   : > { %p1758_p12 = pnand %p1757_p10, %p1756_p9 }
  0x2b   : > { %p1763_p7 = por %p1762_p5, %p1761_p0 }
  0x2c   : > { %p1759_p13 = pneg %p1758_p12 }
  0x2e   : > { %p1764_p11 = pnand %p1763_p7, %p1759_p13 }
  0x30   : > { %1767 = shalt.err (!%p1764_p11)
}
  0x31   : > { %s2658_s19 = smov 8   ;;  %s2659_s22 = smov 128  }
  0x32   : > { %1565 = dma.hbm_to_vmem [thread:$0]  (!%p2022_p2), %s319_s13, 4096, %s321_s23, %s309_s10, %s2659_s22, %s2659_s22, %s2658_s19  }
  0x33   : > { %332 = sbr.rel (%p1956_p8) target bundleno = 487 (0x1e7), region = 52  ;;  %s2042_s18 = sand.u32 (!%p1956_p8), 1, %s1849_s28  }
  0x34   : > { %s1464_s1 = sshll.u32 (!%p1956_p8), %s2042_s18, 8  ;;  %s335_s3 = scalar_lea.sflag (!%p1956_p8), [#allocation5], %s2042_s18 }
  0x35   : > { %s2046_s17 = scalar_lea.vmem (!%p1956_p8), [#allocation4], %s1464_s1 }
  0x38   : > { %1828 = dma.done.wait (%p1943_p4), %s335_s3, 4096  }
  0x39   : > { %1830 = vsyncadd (%p1943_p4), %s335_s3, 4294963200 }
  0x3a   : > { %1832 = dma.done.wait (%p47_p1), [#allocation8], 768  }
  0x3b   : > { %1834 = vsyncadd (%p47_p1), [#allocation8], 4294966528 }
  0x3c   : > { %1836 = dma.done.wait (%p47_p1), [#allocation11], 2560  }
  0x3d   : > { %1838 = vsyncadd (%p47_p1), [#allocation11], 4294964736  ;;  %vm392_vm0 = vcmask 261120   ;;  %v561_v0 = vld [vmem:[#allocation7 + $0x18] sm:$0xff]  ;;  %v560_v1 = vld [vmem:[#allocation7 + $0x10] sm:$0xff]  ;;  %v1865_v9 = vmov 0.0  }
  0x3e   : > { %674 = vmatpush.msra.mxu0 %v561_v0  ;;  %1519 = vmatpush.msra.mxu3 %v561_v0  ;;  %v559_v2 = vld [vmem:[#allocation7 + $0x8] sm:$0xff]  ;;  %v558_v3 = vld [vmem:[#allocation7] sm:$0xff]  ;;  %393 = vst.msk [vmem:[#allocation2] sm:$0xff] %vm392_vm0, %v1865_v9  ;;  %v494_v10 = vld [vmem:[%s2046_s17 + $0x10] sm:$0xff]  ;;  %vm394_vm1 = vcmask 253952   ;;  %s1469_s20 = sshll.u32 %s2042_s18, 6 }
  0x3f   : > { %1518 = vmatpush.msra.mxu2 %v561_v0  ;;  %1517 = vmatpush.msra.mxu1 %v561_v0  ;;  %v492_v4 = vld [vmem:[%s2046_s17] sm:$0xff]  ;;  %v493_v6 = vld [vmem:[%s2046_s17 + $0x8] sm:$0xff]  ;;  %406 = vst.msk [vmem:[#allocation2 + $0x90] sm:$0xff] %vm392_vm0, %v1865_v9  ;;  %v514_v11 = vld [vmem:[%s2046_s17 + $0xb0] sm:$0xff]  ;;  %s2587_s21 = scalar_lea.vmem [#allocation13], %s1469_s20  ;;  %s1516_s25 = sshll.u32 %s1934_s9, 6 }
  0x40   : > { %675 = vmatpush.msra.mxu0 %v560_v1  ;;  %1522 = vmatpush.msra.mxu3 %v560_v1  ;;  %v512_v5 = vld [vmem:[%s2046_s17 + $0xa0] sm:$0xff]  ;;  %v513_v7 = vld [vmem:[%s2046_s17 + $0xa8] sm:$0xff]  ;;  %443 = vst [vmem:[#allocation3] sm:$0xff] %v1865_v9  ;;  %v495_v13 = vld [vmem:[%s2046_s17 + $0x18] sm:$0xff]  ;;  %s1338_s1 = scalar_lea.hbm %s2639_s8, %s1516_s25  ;;  %s1339_s3 = sshll.u32 %s2587_s21, 4  ;;  %s1340_s3 = int_to_ptr.vmem [resolvable:$true] %s1339_s3 }
  0x41   : > { %1521 = vmatpush.msra.mxu2 %v560_v1  ;;  %1520 = vmatpush.msra.mxu1 %v560_v1  ;;  %v508_v8 = vld [vmem:[%s2046_s17 + $0x80] sm:$0xff]  ;;  %v509_v12 = vld [vmem:[%s2046_s17 + $0x88] sm:$0xff]  ;;  %444 = vst [vmem:[#allocation3 + $0x8] sm:$0x1] %v1865_v9  ;;  %v515_v14 = vld [vmem:[%s2046_s17 + $0xb8] sm:$0xff]  ;;  %s1327_s11 = scalar_lea.sflag [#allocation6], %s2042_s18 }
  0x42   : > { %676 = vmatpush.msra.mxu0 %v559_v2  ;;  %1525 = vmatpush.msra.mxu3 %v559_v2  ;;  %446 = vst [vmem:[#allocation3 + $0x10] sm:$0x1] %v1865_v9  ;;  %v510_v15 = vld [vmem:[%s2046_s17 + $0x90] sm:$0xff]  ;;  %v496_v16 = vld [vmem:[%s2046_s17 + $0x20] sm:$0xff]  ;;  %v511_v18 = vld [vmem:[%s2046_s17 + $0x98] sm:$0xff]  ;;  %s1803_s13 = scalar_lea.hbm %s2639_s8, 128 }
  0x43   : > { %1524 = vmatpush.msra.mxu2 %v559_v2  ;;  %1523 = vmatpush.msra.mxu1 %v559_v2  ;;  %447 = vst [vmem:[#allocation3 + $0x20] sm:$0x1] %v1865_v9  ;;  %v516_v17 = vld [vmem:[%s2046_s17 + $0xc0] sm:$0xff]  ;;  %v497_v20 = vld [vmem:[%s2046_s17 + $0x28] sm:$0xff]  ;;  %v498_v23 = vld [vmem:[%s2046_s17 + $0x30] sm:$0xff] }
  0x44   : > { %677 = vmatpush.msra.mxu0 %v558_v3  ;;  %1528 = vmatpush.msra.mxu3 %v558_v3  ;;  %448 = vst [vmem:[#allocation3 + $0x30] sm:$0x1] %v1865_v9  ;;  %v504_v19 = vld [vmem:[%s2046_s17 + $0x60] sm:$0xff]  ;;  %v517_v21 = vld [vmem:[%s2046_s17 + $0xc8] sm:$0xff]  ;;  %v518_v24 = vld [vmem:[%s2046_s17 + $0xd0] sm:$0xff] }
  0x45   : > { %1470 = vmatmul.msk.f32.vlgmr.msra.gmra.mxu0 %vm392_vm0, %v492_v4  ;;  %1490 = vmatmul.msk.f32.vlgmr.msra.gmra.mxu3 %vm392_vm0, %v512_v5  ;;  %449 = vst [vmem:[#allocation3 + $0x40] sm:$0x1] %v1865_v9  ;;  %v505_v22 = vld [vmem:[%s2046_s17 + $0x68] sm:$0xff]  ;;  %v506_v25 = vld [vmem:[%s2046_s17 + $0x70] sm:$0xff]  ;;  %v499_v26 = vld [vmem:[%s2046_s17 + $0x38] sm:$0xff] }
  0x46   : > { %1527 = vmatpush.msra.mxu2 %v558_v3  ;;  %1526 = vmatpush.msra.mxu1 %v558_v3  ;;  %450 = vst [vmem:[#allocation3 + $0x50] sm:$0x1] %v1865_v9  ;;  %v519_v27 = vld [vmem:[%s2046_s17 + $0xd8] sm:$0xff]  ;;  %v500_v28 = vld [vmem:[%s2046_s17 + $0x40] sm:$0xff]  ;;  %v501_v30 = vld [vmem:[%s2046_s17 + $0x48] sm:$0xff] }
  0x47   : > { %1486 = vmatmul.msk.f32.vlgmr.msra.gmra.mxu2 %vm392_vm0, %v508_v8  ;;  %451 = vst [vmem:[#allocation3 + $0x60] sm:$0x1] %v1865_v9  ;;  %1482 = vmatmul.msk.f32.vlgmr.msra.gmra.mxu1 %vm392_vm0, %v504_v19  ;;  %v520_v29 = vld [vmem:[%s2046_s17 + $0xe0] sm:$0xff]  ;;  %v507_v31 = vld [vmem:[%s2046_s17 + $0x78] sm:$0xff]  ;;  %v521_v32 = vld [vmem:[%s2046_s17 + $0xe8] sm:$0xff] }
  0x48   : > { %452 = vst [vmem:[#allocation3 + $0x70] sm:$0x1] %v1865_v9  ;;  %v502_v33 = vld [vmem:[%s2046_s17 + $0x50] sm:$0xff]  ;;  %v503_v35 = vld [vmem:[%s2046_s17 + $0x58] sm:$0xff]  ;;  %v2182_v37 = vld [vmem:[%s2633_s2] ss:$0 sm:$0xff] }
  0x49   : > { %453 = vst [vmem:[#allocation3 + $0x80] sm:$0x1] %v1865_v9  ;;  %v522_v34 = vld [vmem:[%s2046_s17 + $0xf0] sm:$0xff]  ;;  %v523_v36 = vld [vmem:[%s2046_s17 + $0xf8] sm:$0xff]  ;;  %v945_v1 = vld [vmem:[#allocation12 + $0x18] sm:$0xff]  ;;  %s1341_s17 = sshll.u32 %s1338_s1, 4  ;;  %s1342_s17 = int_to_ptr.hbm [resolvable:$true] %s1341_s17 }
  0x4a   : > { %470 = vst [vmem:[#allocation3 + $0x120] sm:$0x1] %v1865_v9  ;;  %v1199_v2 = vld [vmem:[#allocation10 + $0x78] sm:$0xff]  ;;  %1281 = vmatpush.msrb.mxu2 %v945_v1  ;;  %v2307_v1 = vld [vmem:[#allocation9 + $0x7] ss:$0 sm:$0xff]  ;;  %s1797_s16 = sshra.s32 %s1342_s17, 4  ;;  %s1798_s16 = int_to_ptr.hbm [resolvable:$true] %s1797_s16 }
  0x4b   : > { %471 = vst [vmem:[#allocation3 + $0x130] sm:$0x1] %v1865_v9  ;;  %1204 = vmatpush.msrb.mxu1 %v1199_v2  ;;  %s1799_s9 = scalar_lea.hbm %s1798_s16, 64  ;;  %p1804_p11 = scmp.lt.s32.totalorder %s1798_s16, %s2639_s8 }
  0x4c   : > { %472 = vst [vmem:[#allocation3 + $0x140] sm:$0x1] %v1865_v9  ;;  %p1800_p1 = scmp.ne.s32.totalorder %s1798_s16, %s1799_s9  ;;  %p1805_p2 = scmp.lt.s32.totalorder %s1803_s13, %s1799_s9 }
  0x4d   : > { %1471 = vmatmul.msk.f32.gmra.mxu0 %vm392_vm0, %v493_v6  ;;  %1491 = vmatmul.msk.f32.gmra.mxu3 %vm392_vm0, %v513_v7  ;;  %473 = vst [vmem:[#allocation3 + $0x150] sm:$0x1] %v1865_v9 }
  0x4e   : > { %474 = vst [vmem:[#allocation3 + $0x160] sm:$0x1] %v1865_v9  ;;  %p1801_p4 = pnand %p1800_p1, %p2009_p3  ;;  %p1806_p9 = por %p1805_p2, %p1804_p11 }
  0x4f   : > { %1487 = vmatmul.msk.f32.gmra.mxu2 %vm392_vm0, %v509_v12  ;;  %475 = vst [vmem:[#allocation3 + $0x170] sm:$0x1] %v1865_v9  ;;  %1483 = vmatmul.msk.f32.gmra.mxu1 %vm392_vm0, %v505_v22 }
  0x50   : > { %476 = vst [vmem:[#allocation3 + $0x180] sm:$0x1] %v1865_v9  ;;  %p1802_p8 = pneg %p1801_p4 }
  0x51   : > { %477 = vst [vmem:[#allocation3 + $0x190] sm:$0x1] %v1865_v9 }
  0x52   : > { %445 = vst [vmem:[#allocation3] sm:$0x1] %v1865_v9  ;;  %p1807_p10 = pnand %p1806_p9, %p1802_p8 }
  0x53   : > { %550 = vst.msk [vmem:[#allocation2 + $0x1b0] sm:$0xff] %vm392_vm0, %v492_v4 }
  0x54   : > { %538 = vst.msk [vmem:[#allocation2 + $0xe0] sm:$0xff] %vm392_vm0, %v512_v5 }
  0x55   : > { %1472 = vmatmul.msk.f32.gmra.mxu0 %vm392_vm0, %v494_v10  ;;  %1492 = vmatmul.msk.f32.gmra.mxu3 %vm392_vm0, %v514_v11  ;;  %551 = vst.msk [vmem:[#allocation2 + $0x1c0] sm:$0xff] %vm392_vm0, %v493_v6  ;;  %v1198_v6 = vld [vmem:[#allocation10 + $0x70] sm:$0xff] }
  0x56   : > { %539 = vst.msk [vmem:[#allocation2 + $0xf0] sm:$0xff] %vm392_vm0, %v513_v7  ;;  %1205 = vmatpush.msrb.mxu1 %v1198_v6  ;;  %v1187_v6 = vld [vmem:[#allocation10 + $0x18] sm:$0xff] }
  0x57   : > { %1488 = vmatmul.msk.f32.gmra.mxu2 %vm392_vm0, %v510_v15  ;;  %552 = vst.msk [vmem:[#allocation2 + $0x1d0] sm:$0xff] %vm392_vm0, %v494_v10  ;;  %1484 = vmatmul.msk.f32.gmra.mxu1 %vm392_vm0, %v506_v25 }
  0x58   : > { %540 = vst.msk [vmem:[#allocation2 + $0x100] sm:$0xff] %vm392_vm0, %v514_v11 }
  0x59   : > { %553 = vst.msk [vmem:[#allocation2 + $0x1e0] sm:$0xff] %vm392_vm0, %v495_v13 }
  0x5a   : > { %541 = vst.msk [vmem:[#allocation2 + $0x110] sm:$0xff] %vm392_vm0, %v515_v14 }
  0x5b   : > { %554 = vst.msk [vmem:[#allocation2 + $0x1f0] sm:$0xff] %vm392_vm0, %v496_v16 }
  0x5c   : > { %534 = vst.msk [vmem:[#allocation2 + $0xa0] sm:$0xff] %vm392_vm0, %v508_v8 }
  0x5d   : > { %1473 = vmatmul.msk.f32.gmra.mxu0 %vm392_vm0, %v495_v13  ;;  %1493 = vmatmul.msk.f32.gmra.mxu3 %vm392_vm0, %v515_v14  ;;  %525 = vst.msk [vmem:[#allocation2 + $0x11] sm:$0xff] %vm392_vm0, %v516_v17  ;;  %v2360_v13 = vld [vmem:[#allocation9 + $0x6] ss:$0 sm:$0xff] }
  0x5e   : > { %555 = vst.msk [vmem:[#allocation2 + $0x200] sm:$0xff] %vm392_vm0, %v497_v20 }
  0x5f   : > { %1489 = vmatmul.msk.f32.gmra.mxu2 %vm392_vm0, %v511_v18  ;;  %535 = vst.msk [vmem:[#allocation2 + $0xb0] sm:$0xff] %vm392_vm0, %v509_v12  ;;  %1485 = vmatmul.msk.f32.gmra.mxu1 %vm392_vm0, %v507_v31  ;;  %v1197_v12 = vld [vmem:[#allocation10 + $0x68] sm:$0xff] }
  0x60   : > { %526 = vst.msk [vmem:[#allocation2 + $0x21] sm:$0xff] %vm392_vm0, %v517_v21  ;;  %1206 = vmatpush.msrb.mxu1 %v1197_v12  ;;  %v1186_v12 = vld [vmem:[#allocation10 + $0x10] sm:$0xff] }
  0x61   : > { %556 = vst.msk [vmem:[#allocation2 + $0x210] sm:$0xff] %vm392_vm0, %v498_v23 }
  0x62   : > { %536 = vst.msk [vmem:[#allocation2 + $0xc0] sm:$0xff] %vm392_vm0, %v510_v15 }
  0x63   : > { %527 = vst.msk [vmem:[#allocation2 + $0x31] sm:$0xff] %vm392_vm0, %v518_v24 }
  0x64   : > { %557 = vst.msk [vmem:[#allocation2 + $0x220] sm:$0xff] %vm392_vm0, %v499_v26 }
  0x65   : > { %1474 = vmatmul.msk.f32.gmra.mxu0 %vm392_vm0, %v496_v16  ;;  %1494 = vmatmul.msk.f32.gmra.mxu3 %vm392_vm0, %v516_v17  ;;  %537 = vst.msk [vmem:[#allocation2 + $0xd0] sm:$0xff] %vm392_vm0, %v511_v18  ;;  %v1196_v17 = vld [vmem:[#allocation10 + $0x60] sm:$0xff]  ;;  %v944_v18 = vld [vmem:[#allocation12 + $0x10] sm:$0xff] }
  0x66   : > { %528 = vst.msk [vmem:[#allocation2 + $0x41] sm:$0xff] %vm392_vm0, %v519_v27  ;;  %1207 = vmatpush.msrb.mxu1 %v1196_v17  ;;  %1282 = vmatpush.msrb.mxu2 %v944_v18 }
  0x67   : > { %542 = vst.msk [vmem:[#allocation2 + $0x121] sm:$0xff] %vm392_vm0, %v500_v28 }
  0x68   : > { %529 = vst.msk [vmem:[#allocation2 + $0x51] sm:$0xff] %vm392_vm0, %v520_v29 }
  0x69   : > { %546 = vst.msk [vmem:[#allocation2 + $0x161] sm:$0xff] %vm392_vm0, %v504_v19 }
  0x6a   : > { %543 = vst.msk [vmem:[#allocation2 + $0x131] sm:$0xff] %vm392_vm0, %v501_v30 }
  0x6b   : > { %530 = vst.msk [vmem:[#allocation2 + $0x61] sm:$0xff] %vm392_vm0, %v521_v32 }
  0x6c   : > { %547 = vst.msk [vmem:[#allocation2 + $0x171] sm:$0xff] %vm392_vm0, %v505_v22 }
  0x6d   : > { %1475 = vmatmul.msk.f32.gmra.mxu0 %vm392_vm0, %v497_v20  ;;  %1495 = vmatmul.msk.f32.gmra.mxu3 %vm392_vm0, %v517_v21  ;;  %544 = vst.msk [vmem:[#allocation2 + $0x141] sm:$0xff] %vm392_vm0, %v502_v33  ;;  %v1195_v20 = vld [vmem:[#allocation10 + $0x58] sm:$0xff] }
  0x6e   : > { %531 = vst.msk [vmem:[#allocation2 + $0x71] sm:$0xff] %vm392_vm0, %v522_v34  ;;  %1208 = vmatpush.msrb.mxu1 %v1195_v20  ;;  %v1185_v20 = vld [vmem:[#allocation10 + $0x8] sm:$0xff] }
  0x6f   : > { %548 = vst.msk [vmem:[#allocation2 + $0x181] sm:$0xff] %vm392_vm0, %v506_v25 }
  0x70   : > { %545 = vst.msk [vmem:[#allocation2 + $0x151] sm:$0xff] %vm392_vm0, %v503_v35 }
  0x71   : > { %549 = vst.msk [vmem:[#allocation2 + $0x191] sm:$0xff] %vm392_vm0, %v507_v31 }
  0x72   : > { %532 = vst.msk [vmem:[#allocation2 + $0x81] sm:$0xff] %vm392_vm0, %v523_v36 }
  0x73   : > { %395 = vst.msk [vmem:[#allocation2 + $0x8] sm:$0x1] %vm394_vm1, %v1865_v9 }
  0x74   : > { %396 = vst.msk [vmem:[#allocation2] sm:$0x1] %vm394_vm1, %v1865_v9 }
  0x75   : > { %1476 = vmatmul.msk.f32.gmra.mxu0 %vm392_vm0, %v498_v23  ;;  %1496 = vmatmul.msk.f32.gmra.mxu3 %vm392_vm0, %v518_v24  ;;  %v1194_v24 = vld [vmem:[#allocation10 + $0x50] sm:$0xff]  ;;  %397 = vst.msk [vmem:[#allocation2 + $0x10] sm:$0x1] %vm394_vm1, %v1865_v9 }
  0x76   : > { %1209 = vmatpush.msrb.mxu1 %v1194_v24  ;;  %v2284_v24 = vld [vmem:[#allocation9 + $0x1] ss:$0 sm:$0xff]  ;;  %421 = vst.msk [vmem:[#allocation2 + $0x120] sm:$0x1] %vm394_vm1, %v1865_v9 }
  0x77   : > { %398 = vst.msk [vmem:[#allocation2 + $0x20] sm:$0x1] %vm394_vm1, %v1865_v9 }
  0x78   : > { %399 = vst.msk [vmem:[#allocation2 + $0x30] sm:$0x1] %vm394_vm1, %v1865_v9 }
  0x79   : > { %400 = vst.msk [vmem:[#allocation2 + $0x40] sm:$0x1] %vm394_vm1, %v1865_v9 }
  0x7a   : > { %401 = vst.msk [vmem:[#allocation2 + $0x50] sm:$0x1] %vm394_vm1, %v1865_v9 }
  0x7b   : > { %402 = vst.msk [vmem:[#allocation2 + $0x60] sm:$0x1] %vm394_vm1, %v1865_v9 }
  0x7c   : > { %403 = vst.msk [vmem:[#allocation2 + $0x70] sm:$0x1] %vm394_vm1, %v1865_v9 }
  0x7d   : > { %1477 = vmatmul.msk.f32.gmra.mxu0 %vm392_vm0, %v499_v26  ;;  %1497 = vmatmul.msk.f32.gmra.mxu3 %vm392_vm0, %v519_v27  ;;  %404 = vst.msk [vmem:[#allocation2 + $0x80] sm:$0x1] %vm394_vm1, %v1865_v9 }
  0x7e   : > { %422 = vst.msk [vmem:[#allocation2 + $0x130] sm:$0x1] %vm394_vm1, %v1865_v9 }
  0x7f   : > { %423 = vst.msk [vmem:[#allocation2 + $0x140] sm:$0x1] %vm394_vm1, %v1865_v9 }
  0x80   : > { %424 = vst.msk [vmem:[#allocation2 + $0x150] sm:$0x1] %vm394_vm1, %v1865_v9 }
  0x81   : > { %425 = vst.msk [vmem:[#allocation2 + $0x160] sm:$0x1] %vm394_vm1, %v1865_v9 }
  0x82   : > { %426 = vst.msk [vmem:[#allocation2 + $0x170] sm:$0x1] %vm394_vm1, %v1865_v9 }
  0x83   : > { %427 = vst.msk [vmem:[#allocation2 + $0x180] sm:$0x1] %vm394_vm1, %v1865_v9 }
  0x84   : > { %428 = vst.msk [vmem:[#allocation2 + $0x190] sm:$0x1] %vm394_vm1, %v1865_v9 }
  0x85   : > { %1478 = vmatmul.msk.f32.gmra.mxu0 %vm392_vm0, %v500_v28  ;;  %1498 = vmatmul.msk.f32.gmra.mxu3 %vm392_vm0, %v520_v29  ;;  %v1193_v29 = vld [vmem:[#allocation10 + $0x48] sm:$0xff] }
  0x86   : > { %1210 = vmatpush.msrb.mxu1 %v1193_v29  ;;  %v946_v29 = vld [vmem:[#allocation3] sm:$0xff] }
  0x8d   : > { %1479 = vmatmul.msk.f32.gmra.mxu0 %vm392_vm0, %v501_v30  ;;  %1499 = vmatmul.msk.f32.gmra.mxu3 %vm392_vm0, %v521_v32 }
  0x95   : > { %1480 = vmatmul.msk.f32.gmra.mxu0 %vm392_vm0, %v502_v33  ;;  %1500 = vmatmul.msk.f32.gmra.mxu3 %vm392_vm0, %v522_v34  ;;  %v1192_v34 = vld [vmem:[#allocation10 + $0x40] sm:$0xff] }
  0x96   : > { %1211 = vmatpush.msrb.mxu1 %v1192_v34 }
  0x9d   : > { %1481 = vmatmul.msk.f32.gmra.mxu0 %vm392_vm0, %v503_v35  ;;  %1501 = vmatmul.msk.f32.gmra.mxu3 %vm392_vm0, %v523_v36  ;;  %v943_v35 = vld [vmem:[#allocation12 + $0x8] sm:$0xff] }
  0x9e   : > { %1283 = vmatpush.msrb.mxu2 %v943_v35 }
  0xc2   : > { %v679_v38 = vpop.f32.mrf.mxu0 }
  0xc3   : > { %v2185_v39 = vadd.f32 %v2182_v37, %v679_v38  ;;  %v1191_v38 = vld [vmem:[#allocation10 + $0x38] sm:$0xff] }
  0xc4   : > { %v715_v14 = vpop.f32.mrf.mxu1  ;;  %1212 = vmatpush.msrb.mxu1 %v1191_v38  ;;  %v841_v38 = vld [vmem:[#allocation2] sm:$0xff] }
  0xc5   : > { %v775_v40 = vmax.f32 %v2185_v39, 0.0  ;;  %v2232_v16 = vadd.f32 %v2182_v37, %v715_v14 }
  0xc7   : > { %v787_v19 = vmax.f32 %v2232_v16, 0.0 }
  0xc8   : > { %v739_v41 = vpop.f32.mrf.mxu3 }
  0xc9   : > { %v2189_v42 = vadd.f32 %v2182_v37, %v739_v41  ;;  %829 = vst [vmem:[#allocation3 + $0x161] sm:$0xff] %v787_v19 }
  0xca   : > { %v682_v43 = vpop.f32.mrf.mxu0  ;;  %v727_v49 = vpop.f32.mrf.mxu2 }
  0xcb   : > { %v795_v44 = vmax.f32 %v2189_v42, 0.0  ;;  %v2193_v45 = vadd.f32 %v2182_v37, %v682_v43  ;;  %v2200_v51 = vadd.f32 %v2182_v37, %v727_v49 }
  0xcc   : > { %v718_v31 = vpop.f32.mrf.mxu1 }
  0xcd   : > { %v776_v46 = vmax.f32 %v2193_v45, 0.0  ;;  %v791_v54 = vmax.f32 %v2200_v51, 0.0  ;;  %v2254_v33 = vadd.f32 %v2182_v37, %v718_v31  ;;  %v2288_v31 = vld [vmem:[#allocation9] ss:$0 sm:$0xff] }
  0xcf   : > { %v2644_v36 = vmax.f32 %v2254_v33, 0.0  ;;  %v1130_v16 = vmul.f32 %v2307_v1, %v791_v54 }
  0xd0   : > { %v742_v47 = vpop.f32.mrf.mxu3 }
  0xd1   : > { %v2197_v48 = vadd.f32 %v2182_v37, %v742_v47  ;;  %830 = vst [vmem:[#allocation3 + $0x171] sm:$0xff] %v2644_v36  ;;  %v1190_v47 = vld [vmem:[#allocation10 + $0x30] sm:$0xff] }
  0xd2   : > { %v685_v50 = vpop.f32.mrf.mxu0  ;;  %v730_v58 = vpop.f32.mrf.mxu2  ;;  %1213 = vmatpush.msrb.mxu1 %v1190_v47 }
  0xd3   : > { %v796_v52 = vmax.f32 %v2197_v48, 0.0  ;;  %v2204_v53 = vadd.f32 %v2182_v37, %v685_v50  ;;  %v2212_v60 = vadd.f32 %v2182_v37, %v730_v58  ;;  %v1189_v58 = vld [vmem:[#allocation10 + $0x28] sm:$0xff]  ;;  %v2382_v48 = vld [vmem:[#allocation9 + $0x8] ss:$0 sm:$0xff] }
  0xd4   : > { %1214 = vmatpush.msrb.mxu1 %v1189_v58  ;;  %v851_v58 = vld [vmem:[#allocation2 + $0xa0] sm:$0xff] }
  0xd5   : > { %v777_v55 = vmax.f32 %v2204_v53, 0.0  ;;  %v2646_v63 = vmax.f32 %v2212_v60, 0.0  ;;  %v2371_v53 = vmul.f32 %v2284_v24, %v796_v52 }
  0xd8   : > { %v745_v56 = vpop.f32.mrf.mxu3 }
  0xd9   : > { %v2209_v57 = vadd.f32 %v2182_v37, %v745_v56 }
  0xda   : > { %v688_v59 = vpop.f32.mrf.mxu0  ;;  %v733_v5 = vpop.f32.mrf.mxu2 }
  0xdb   : > { %v2642_v61 = vmax.f32 %v2209_v57, 0.0  ;;  %v2216_v62 = vadd.f32 %v2182_v37, %v688_v59  ;;  %v2224_v8 = vadd.f32 %v2182_v37, %v733_v5  ;;  %v721_v59 = vpop.f32.mrf.mxu1 }
  0xdc   : > { %v2270_v2 = vadd.f32 %v2182_v37, %v721_v59  ;;  %v956_v59 = vmul.f32 %v2288_v31, %v946_v29  ;;  %v910_v29 = vld [vmem:[#allocation2 + $0x121] sm:$0xff] }
  0xdd   : > { %823 = vst [vmem:[#allocation3 + $0x100] sm:$0xff] %v2642_v61 }
  0xde   : > { %v2643_v5 = vmax.f32 %v2270_v2, 0.0 }
  0xe0   : > { %v748_v3 = vpop.f32.mrf.mxu3  ;;  %831 = vst [vmem:[#allocation3 + $0x181] sm:$0xff] %v2643_v5 }
  0xe1   : > { %v749_v4 = vadd.f32 %v2182_v37, %v748_v3  ;;  %v1188_v3 = vld [vmem:[#allocation10 + $0x20] sm:$0xff] }
  0xe2   : > { %v691_v7 = vpop.f32.mrf.mxu0  ;;  %v736_v23 = vpop.f32.mrf.mxu2  ;;  %1215 = vmatpush.msrb.mxu1 %v1188_v3  ;;  %v974_v3 = vmul.f32 0.0, %v2284_v24 }
  0xe3   : > { %v798_v10 = vmax.f32 %v749_v4, 0.0  ;;  %v2227_v11 = vadd.f32 %v2182_v37, %v691_v7  ;;  %v2239_v26 = vadd.f32 %v2182_v37, %v736_v23  ;;  %v942_v4 = vld [vmem:[#allocation12] sm:$0xff] }
  0xe4   : > { %1284 = vmatpush.msrb.mxu2 %v942_v4  ;;  %1216 = vmatpush.msrb.mxu1 %v1187_v6  ;;  %v990_v6 = vld [vmem:[#allocation3 + $0x1] sm:$0xff] }
  0xe5   : > { %824 = vst [vmem:[#allocation3 + $0x110] sm:$0xff] %v798_v10  ;;  %v779_v15 = vmax.f32 %v2227_v11, 0.0  ;;  %v2645_v30 = vmax.f32 %v2239_v26, 0.0 }
  0xe6   : > { %1217 = vmatpush.msrb.mxu1 %v1186_v12  ;;  %v2301_v12 = vld [vmem:[#allocation9 + $0x2] ss:$0 sm:$0xff] }
  0xe8   : > { %v751_v21 = vpop.f32.mrf.mxu3  ;;  %1218 = vmatpush.msrb.mxu1 %v1185_v20 }
  0xe9   : > { %v752_v22 = vadd.f32 %v2182_v37, %v751_v21  ;;  %v982_v21 = vadd.f32 %v974_v3, %v956_v59 }
  0xea   : > { %v694_v25 = vpop.f32.mrf.mxu0 }
  0xeb   : > { %v2241_v27 = vmax.f32 %v752_v22, 0.0  ;;  %v2244_v28 = vadd.f32 %v2182_v37, %v694_v25 }
  0xed   : > { %808 = vst [vmem:[#allocation3 + $0x11] sm:$0xff] %v2241_v27 }
  0xf0   : > { %v754_v41 = vpop.f32.mrf.mxu3 }
  0xf1   : > { %v755_v43 = vadd.f32 %v2182_v37, %v754_v41  ;;  %v850_v41 = vld [vmem:[#allocation2 + $0x90] sm:$0xff] }
  0xf2   : > { %v697_v49 = vpop.f32.mrf.mxu0  ;;  %v859_v4 = vadd.f32 %v850_v41, %v841_v38  ;;  %v1000_v38 = vmul.f32 %v2301_v12, %v990_v6 }
  0xf3   : > { %v2262_v50 = vmax.f32 %v755_v43, 0.0  ;;  %v2265_v56 = vadd.f32 %v2182_v37, %v697_v49  ;;  %v1184_v43 = vld [vmem:[#allocation10] sm:$0xff] }
  0xf4   : > { %v842_v49 = vld [vmem:[#allocation2 + $0x10] sm:$0xff]  ;;  %1219 = vmatpush.msrb.mxu1 %v1184_v43  ;;  %v886_v43 = vld [vmem:[#allocation2 + $0x120] sm:$0xff] }
  0xf5   : > { %809 = vst [vmem:[#allocation3 + $0x21] sm:$0xff] %v2262_v50  ;;  %v860_v20 = vadd.f32 %v851_v58, %v842_v49  ;;  %v2314_v49 = vld [vmem:[#allocation9 + $0x3] ss:$0 sm:$0xff]  ;;  %v1094_v58 = vld [vmem:[#allocation3 + $0x10] sm:$0xff] }
  0xf6   : > { %v957_v45 = vmul.f32 %v2288_v31, %v1094_v58 }
  0xf8   : > { %v757_v7 = vpop.f32.mrf.mxu3 }
  0xf9   : > { %v758_v10 = vadd.f32 %v2182_v37, %v757_v7  ;;  %v868_v7 = vld [vmem:[#allocation2 + $0x1] sm:$0xff] }
  0xfa   : > { %v700_v14 = vpop.f32.mrf.mxu0  ;;  %v877_v61 = vadd.f32 %v868_v7, %v859_v4 }
  0xfb   : > { %v2276_v17 = vmax.f32 %v758_v10, 0.0  ;;  %v2279_v18 = vadd.f32 %v2182_v37, %v700_v14  ;;  %v894_v10 = vld [vmem:[#allocation2 + $0x1b0] sm:$0xff] }
  0xfc   : > { %v902_v5 = vadd.f32 %v894_v10, %v886_v43  ;;  %v2344_v43 = vmul.f32 %v2307_v1, %v795_v44 }
  0xfd   : > { %810 = vst [vmem:[#allocation3 + $0x31] sm:$0xff] %v2276_v17 }
  0xfe   : > { %v918_v3 = vadd.f32 %v910_v29, %v902_v5  ;;  %v1020_v5 = vld [vmem:[#allocation3 + $0x160] sm:$0xff] }
  0xff   : > { %v2349_v29 = vld [vmem:[#allocation9 + $0x5] ss:$0 sm:$0xff]  ;;  %v1030_v32 = vmul.f32 %v2314_v49, %v1020_v5 }
 0x100   : > { %v760_v22 = vpop.f32.mrf.mxu3 }
 0x101   : > { %v761_v23 = vadd.f32 %v2182_v37, %v760_v22  ;;  %v2303_v22 = vld [vmem:[#allocation9 + $0x4] ss:$0 sm:$0xff] }
 0x102   : > { %v703_v25 = vpop.f32.mrf.mxu0  ;;  %v1052_v4 = vmul.f32 %v2303_v22, %v775_v40  ;;  %v2327_v6 = vmul.f32 %v2303_v22, %v776_v46  ;;  %v926_v40 = vadd.f32 %v918_v3, %v877_v61  ;;  %v975_v46 = vmul.f32 %v2284_v24, %v791_v54 }
 0x103   : > { %v2290_v34 = vmax.f32 %v761_v23, 0.0  ;;  %v2293_v35 = vadd.f32 %v2182_v37, %v703_v25  ;;  %v869_v25 = vld [vmem:[#allocation2 + $0x11] sm:$0xff]  ;;  %v2354_v61 = vmul.f32 %v2303_v22, %v777_v55  ;;  %v2374_v55 = vld [vmem:[#allocation3 + $0x20] sm:$0xff]  ;;  %v1002_v54 = vmul.f32 %v2301_v12, %v2262_v50 }
 0x104   : > { %v2319_v59 = vadd.f32 %v869_v25, %v860_v20 }
 0x105   : > { %811 = vst [vmem:[#allocation3 + $0x41] sm:$0xff] %v2290_v34  ;;  %v783_v47 = vmax.f32 %v2293_v35, 0.0  ;;  %v1004_v39 = vmul.f32 %v2301_v12, %v2290_v34 }
 0x107   : > { %825 = vst [vmem:[#allocation3 + $0x121] sm:$0xff] %v783_v47 }
 0x108   : > { %v763_v14 = vpop.f32.mrf.mxu3 }
 0x109   : > { %v764_v23 = vadd.f32 %v2182_v37, %v763_v14  ;;  %v978_v14 = vmul.f32 %v2284_v24, %v2645_v30  ;;  %v934_v30 = vadd.f32 %v926_v40, %v2319_v59  ;;  %v1001_v40 = vmul.f32 %v2301_v12, %v2241_v27 }
 0x10a   : > { %v706_v41 = vpop.f32.mrf.mxu0 }
 0x10b   : > { %v2309_v0 = vmax.f32 %v764_v23, 0.0  ;;  %v2312_v36 = vadd.f32 %v2182_v37, %v706_v41  ;;  %v1008_v23 = vadd.f32 %v1000_v38, %v982_v21  ;;  %v979_v41 = vmul.f32 %v2284_v24, %v795_v44  ;;  %1502 = vmatmul.msk.f32.vlgmr.msrb.gmra.mxu2 %vm392_vm0, %v934_v30 }
 0x10c   : > { %v2329_v7 = vld [vmem:[#allocation3 + $0x40] sm:$0xff]  ;;  %v1078_v30 = vmul.f32 %v2349_v29, %v783_v47 }
 0x10d   : > { %812 = vst [vmem:[#allocation3 + $0x51] sm:$0xff] %v2309_v0  ;;  %v2647_v10 = vmax.f32 %v2312_v36, 0.0  ;;  %v960_v20 = vmul.f32 %v2288_v31, %v2329_v7 }
 0x10e   : > { %v1016_v25 = vld [vmem:[#allocation3 + $0x120] sm:$0xff] }
 0x10f   : > { %826 = vst [vmem:[#allocation3 + $0x131] sm:$0xff] %v2647_v10  ;;  %v1026_v21 = vmul.f32 %v2314_v49, %v1016_v25  ;;  %v986_v38 = vadd.f32 %v978_v14, %v960_v20  ;;  %v2366_v25 = vmul.f32 %v2307_v1, %v796_v52  ;;  %v1056_v20 = vmul.f32 %v2303_v22, %v779_v15 }
 0x110   : > { %v766_v3 = vpop.f32.mrf.mxu3  ;;  %v983_v52 = vadd.f32 %v975_v46, %v957_v45  ;;  %v1104_v45 = vmul.f32 %v2360_v13, %v1094_v58  ;;  %v958_v46 = vmul.f32 %v2288_v31, %v2374_v55  ;;  %v1021_v58 = vld [vmem:[#allocation3 + $0x170] sm:$0xff] }
 0x111   : > { %v767_v42 = vadd.f32 %v2182_v37, %v766_v3  ;;  %v1034_v44 = vadd.f32 %v1026_v21, %v1008_v23  ;;  %v1012_v14 = vadd.f32 %v1004_v39, %v986_v38  ;;  %v976_v23 = vmul.f32 %v2284_v24, %v2646_v63 }
 0x112   : > { %v709_v5 = vpop.f32.mrf.mxu0  ;;  %v1082_v38 = vmul.f32 %v2349_v29, %v787_v19  ;;  %v1156_v19 = vmul.f32 %v2382_v48, %v2241_v27 }
 0x113   : > { %v2389_v39 = vmax.f32 %v767_v42, 0.0  ;;  %v2392_v11 = vadd.f32 %v2182_v37, %v709_v5  ;;  %v1060_v15 = vadd.f32 %v1052_v4, %v1034_v44  ;;  %v1038_v21 = vadd.f32 %v1030_v32, %v1012_v14 }
 0x114   : > { %v1098_v3 = vld [vmem:[#allocation3 + $0x50] sm:$0xff]  ;;  %v1005_v42 = vmul.f32 %v2301_v12, %v2309_v0  ;;  %v984_v51 = vadd.f32 %v976_v23, %v958_v46 }
 0x115   : > { %813 = vst [vmem:[#allocation3 + $0x61] sm:$0xff] %v2389_v39  ;;  %v785_v35 = vmax.f32 %v2392_v11, 0.0  ;;  %v1086_v4 = vadd.f32 %v1078_v30, %v1060_v15  ;;  %v961_v47 = vmul.f32 %v2288_v31, %v1098_v3  ;;  %v1064_v44 = vadd.f32 %v1056_v20, %v1038_v21 }
 0x116   : > { %v1017_v32 = vld [vmem:[#allocation3 + $0x130] sm:$0xff]  ;;  %v1108_v14 = vmul.f32 %v2360_v13, %v1098_v3  ;;  %v1009_v15 = vadd.f32 %v1001_v40, %v983_v52  ;;  %v1031_v20 = vmul.f32 %v2314_v49, %v1021_v58  ;;  %v724_v52 = vpop.f32.mrf.mxu1  ;;  %v1157_v3 = vmul.f32 %v2382_v48, %v2262_v50 }
 0x117   : > { %827 = vst [vmem:[#allocation3 + $0x141] sm:$0xff] %v785_v35  ;;  %v1112_v5 = vadd.f32 %v1104_v45, %v1086_v4  ;;  %v1027_v30 = vmul.f32 %v2314_v49, %v1017_v32  ;;  %v987_v63 = vadd.f32 %v979_v41, %v961_v47  ;;  %v1090_v27 = vadd.f32 %v1082_v38, %v1064_v44  ;;  %v2434_v41 = vld [vmem:[%s2635_s4] ss:$0 sm:$0xff]  ;;  %v1096_v32 = vld [vmem:[#allocation3 + $0x30] sm:$0xff] }
 0x118   : > { %v769_v10 = vpop.f32.mrf.mxu3  ;;  %v2660_v38 = vmax.f32 %v2312_v36, 0.0  ;;  %v2661_v47 = vmax.f32 %v2244_v28, 0.0  ;;  %v2457_v50 = vadd.f32 %v2182_v37, %v724_v52  ;;  %v1105_v28 = vmul.f32 %v2360_v13, %v2374_v55 }
 0x119   : > { %v770_v21 = vadd.f32 %v2182_v37, %v769_v10  ;;  %v1138_v40 = vadd.f32 %v1130_v16, %v1112_v5  ;;  %v1035_v45 = vadd.f32 %v1027_v30, %v1009_v15  ;;  %v1013_v23 = vadd.f32 %v1005_v42, %v987_v63  ;;  %v843_v5 = vld [vmem:[#allocation2 + $0x20] sm:$0xff]  ;;  %v852_v15 = vld [vmem:[#allocation2 + $0xb0] sm:$0xff] }
 0x11a   : > { %v712_v46 = vpop.f32.mrf.mxu0  ;;  %v1079_v10 = vmul.f32 %v2349_v29, %v2660_v38  ;;  %v1116_v4 = vadd.f32 %v1108_v14, %v1090_v27  ;;  %v1057_v58 = vmul.f32 %v2303_v22, %v2661_v47  ;;  %v1010_v44 = vadd.f32 %v1002_v54, %v984_v51 }
 0x11b   : > { %v2446_v16 = vmax.f32 %v770_v21, 0.0  ;;  %v2449_v63 = vadd.f32 %v2182_v37, %v712_v46  ;;  %v1164_v42 = vadd.f32 %v1156_v19, %v1138_v40  ;;  %v1061_v36 = vadd.f32 %v2327_v6, %v1035_v45 }
 0x11c   : > { %v2462_v14 = vadd.f32 %v2344_v43, %v1116_v4  ;;  %v1039_v27 = vadd.f32 %v1031_v20, %v1013_v23  ;;  %v2662_v21 = vmax.f32 %v2212_v60, 0.0  ;;  %v959_v43 = vmul.f32 %v2288_v31, %v1096_v32  ;;  %v1099_v46 = vld [vmem:[#allocation3 + $0x60] sm:$0xff] }
 0x11d   : > { %814 = vst [vmem:[#allocation3 + $0x71] sm:$0xff] %v2446_v16  ;;  %v786_v19 = vmax.f32 %v2449_v63, 0.0  ;;  %v1176_v6 = vadd.f32 %v2434_v41, %v1164_v42  ;;  %v1087_v30 = vadd.f32 %v1079_v10, %v1061_v36  ;;  %v2663_v54 = vmax.f32 %v2224_v8, 0.0  ;;  %v895_v4 = vld [vmem:[#allocation2 + $0x1c0] sm:$0xff] }
 0x11e   : > { %v1131_v55 = vmul.f32 %v2307_v1, %v2662_v21  ;;  %v1018_v51 = vld [vmem:[#allocation3 + $0x140] sm:$0xff]  ;;  %v2664_v40 = vmax.f32 %v2254_v33, 0.0  ;;  %v1003_v23 = vmul.f32 %v2301_v12, %v2276_v17  ;;  %v790_v38 = vmax.f32 %v2457_v50, 0.0 }
 0x11f   : > { %v977_v52 = vmul.f32 %v2284_v24, %v2663_v54  ;;  %828 = vst [vmem:[#allocation3 + $0x151] sm:$0xff] %v786_v19  ;;  %1220 = vmatmul.f32.vlgmr.msrb.gmra.mxu1 %v1176_v6  ;;  %v1113_v20 = vadd.f32 %v1105_v28, %v1087_v30  ;;  %v1028_v60 = vmul.f32 %v2314_v49, %v1018_v51  ;;  %v896_v6 = vld [vmem:[#allocation2 + $0x1d0] sm:$0xff]  ;;  %v870_v51 = vld [vmem:[#allocation2 + $0x21] sm:$0xff] }
 0x120   : > { %v1083_v45 = vmul.f32 %v2349_v29, %v2664_v40  ;;  %v772_v10 = vpop.f32.mrf.mxu3  ;;  %v861_v33 = vadd.f32 %v852_v15, %v843_v5  ;;  %v1065_v47 = vadd.f32 %v1057_v58, %v1039_v27  ;;  %v1109_v42 = vmul.f32 %v2360_v13, %v1099_v46  ;;  %v887_v5 = vld [vmem:[#allocation2 + $0x130] sm:$0xff]  ;;  %832 = vst [vmem:[#allocation3 + $0x191] sm:$0xff] %v790_v38 }
 0x121   : > { %v2491_v36 = vadd.f32 %v2182_v37, %v772_v10  ;;  %v1139_v28 = vadd.f32 %v1131_v55, %v1113_v20  ;;  %v1036_v30 = vadd.f32 %v1028_v60, %v1010_v44  ;;  %v962_v21 = vmul.f32 %v2288_v31, %v1099_v46  ;;  %v911_v15 = vld [vmem:[#allocation2 + $0x131] sm:$0xff]  ;;  %v853_v20 = vld [vmem:[#allocation2 + $0xc0] sm:$0xff] }
 0x122   : > { %v1080_v58 = vmul.f32 %v2349_v29, %v785_v35  ;;  %v1106_v27 = vmul.f32 %v2360_v13, %v1096_v32  ;;  %v985_v54 = vadd.f32 %v977_v52, %v959_v43  ;;  %v1091_v37 = vadd.f32 %v1083_v45, %v1065_v47  ;;  %v844_v46 = vld [vmem:[#allocation2 + $0x30] sm:$0xff]  ;;  %v888_v60 = vld [vmem:[#allocation2 + $0x140] sm:$0xff] }
 0x123   : > { %v806_v44 = vmax.f32 %v2491_v36, 0.0  ;;  %v903_v55 = vadd.f32 %v895_v4, %v887_v5  ;;  %v1165_v40 = vadd.f32 %v1157_v3, %v1139_v28  ;;  %v1062_v10 = vadd.f32 %v2354_v61, %v1036_v30  ;;  %v912_v35 = vld [vmem:[#allocation2 + $0x141] sm:$0xff]  ;;  %v871_v5 = vld [vmem:[#allocation2 + $0x31] sm:$0xff] }
 0x124   : > { %v904_v11 = vadd.f32 %v896_v6, %v888_v60  ;;  %v1117_v32 = vadd.f32 %v1109_v42, %v1091_v37  ;;  %v988_v43 = vadd.f32 %v2371_v53, %v962_v21  ;;  %v1006_v9 = vmul.f32 %v2301_v12, %v2389_v39  ;;  %v1022_v61 = vld [vmem:[#allocation3 + $0x180] sm:$0xff] }
 0x125   : > { %815 = vst [vmem:[#allocation3 + $0x81] sm:$0xff] %v806_v44  ;;  %v879_v3 = vadd.f32 %v870_v51, %v861_v33  ;;  %v919_v52 = vadd.f32 %v911_v15, %v903_v55  ;;  %v1177_v45 = vadd.f32 %v2434_v41, %v1165_v40  ;;  %v1088_v4 = vadd.f32 %v1080_v58, %v1062_v10  ;;  %v889_v58 = vld [vmem:[#allocation2 + $0x150] sm:$0xff]  ;;  %v897_v37 = vld [vmem:[#allocation2 + $0x1e0] sm:$0xff] }
 0x126   : > { %v862_v47 = vadd.f32 %v853_v20, %v844_v46  ;;  %v2665_v28 = vmax.f32 %v2224_v8, 0.0  ;;  %v1011_v42 = vadd.f32 %v1003_v23, %v985_v54  ;;  %v1019_v30 = vld [vmem:[#allocation3 + $0x150] sm:$0xff]  ;;  %v2516_v53 = vadd.f32 %v2366_v25, %v1117_v32 }
 0x127   : > { %v927_v21 = vadd.f32 %v919_v52, %v2319_v59  ;;  %1223 = vmatmul.f32.gmra.mxu1 %v1177_v45  ;;  %v920_v33 = vadd.f32 %v912_v35, %v904_v11  ;;  %v1114_v51 = vadd.f32 %v1106_v27, %v1088_v4  ;;  %v1029_v15 = vmul.f32 %v2314_v49, %v1019_v30  ;;  %v845_v35 = vld [vmem:[#allocation2 + $0x40] sm:$0xff]  ;;  %v854_v32 = vld [vmem:[#allocation2 + $0xd0] sm:$0xff] }
 0x128   : > { %v1132_v6 = vmul.f32 %v2307_v1, %v2665_v28  ;;  %v2666_v55 = vmax.f32 %v2216_v62, 0.0  ;;  %v1014_v40 = vadd.f32 %v1006_v9, %v988_v43  ;;  %v1032_v23 = vmul.f32 %v2314_v49, %v1022_v61  ;;  %v913_v43 = vld [vmem:[#allocation2 + $0x151] sm:$0xff] }
 0x129   : > { %v935_v54 = vadd.f32 %v927_v21, %v879_v3  ;;  %v1158_v59 = vmul.f32 %v2382_v48, %v2276_v17  ;;  %v1037_v46 = vadd.f32 %v1029_v15, %v1011_v42  ;;  %v880_v20 = vadd.f32 %v871_v5, %v862_v47  ;;  %v1100_v61 = vld [vmem:[#allocation3 + $0x70] sm:$0xff]  ;;  %v971_v5 = vld [vmem:[#allocation3 + $0x100] sm:$0xff] }
 0x12a   : > { %v1055_v8 = vmul.f32 %v2303_v22, %v2666_v55  ;;  %v1140_v25 = vadd.f32 %v1132_v6, %v1114_v51  ;;  %v1081_v27 = vmul.f32 %v2349_v29, %v786_v19  ;;  %v928_v60 = vadd.f32 %v920_v33, %v879_v3  ;;  %v872_v33 = vld [vmem:[#allocation2 + $0x41] sm:$0xff]  ;;  %v898_v15 = vld [vmem:[#allocation2 + $0x1f0] sm:$0xff] }
 0x12b   : > { %1503 = vmatmul.msk.f32.gmra.mxu2 %vm392_vm0, %v935_v54  ;;  %v905_v10 = vadd.f32 %v897_v37, %v889_v58  ;;  %v1040_v9 = vadd.f32 %v1032_v23, %v1014_v40  ;;  %v2667_v52 = vmax.f32 %v2265_v56, 0.0  ;;  %v2668_v45 = vmax.f32 %v2270_v2, 0.0  ;;  %v890_v51 = vld [vmem:[#allocation2 + $0x160] sm:$0xff] }
 0x12c   : > { %v1166_v62 = vadd.f32 %v1158_v59, %v1140_v25  ;;  %v1063_v11 = vadd.f32 %v1055_v8, %v1037_v46  ;;  %v1107_v3 = vmul.f32 %v2360_v13, %v2329_v7  ;;  %v2669_v47 = vmax.f32 %v2239_v26, 0.0 }
 0x12d   : > { %v1058_v17 = vmul.f32 %v2303_v22, %v2667_v52  ;;  %v1084_v63 = vmul.f32 %v2349_v29, %v2668_v45  ;;  %v1110_v56 = vmul.f32 %v2360_v13, %v1100_v61  ;;  %v936_v42 = vadd.f32 %v928_v60, %v880_v20  ;;  %v855_v60 = vld [vmem:[#allocation2 + $0xe0] sm:$0xff] }
 0x12e   : > { %v1178_v19 = vadd.f32 %v2434_v41, %v1166_v62  ;;  %v1089_v4 = vadd.f32 %v1081_v27, %v1063_v11  ;;  %v1133_v28 = vmul.f32 %v2307_v1, %v2669_v47  ;;  %v863_v30 = vadd.f32 %v854_v32, %v845_v35  ;;  %v846_v27 = vld [vmem:[#allocation2 + $0x50] sm:$0xff]  ;;  %v914_v62 = vld [vmem:[#allocation2 + $0x161] sm:$0xff] }
 0x12f   : > { %v1066_v6 = vadd.f32 %v1058_v17, %v1040_v9  ;;  %v921_v2 = vadd.f32 %v913_v43, %v905_v10  ;;  %v1159_v7 = vmul.f32 %v2382_v48, %v2290_v34  ;;  %v963_v26 = vmul.f32 %v2288_v31, %v1100_v61  ;;  %v873_v43 = vld [vmem:[#allocation2 + $0x51] sm:$0xff]  ;;  %v899_v52 = vld [vmem:[#allocation2 + $0x200] sm:$0xff] }
 0x130   : > { %1226 = vmatmul.f32.gmra.mxu1 %v1178_v19  ;;  %v1115_v21 = vadd.f32 %v1107_v3, %v1089_v4  ;;  %v2670_v8 = vmax.f32 %v2209_v57, 0.0  ;;  %v981_v23 = vmul.f32 %v2284_v24, %v971_v5  ;;  %v881_v54 = vadd.f32 %v872_v33, %v863_v30  ;;  %v1023_v24 = vld [vmem:[#allocation3 + $0x190] sm:$0xff]  ;;  %v847_v3 = vld [vmem:[#allocation2 + $0x60] sm:$0xff] }
 0x131   : > { %v1092_v58 = vadd.f32 %v1084_v63, %v1066_v6  ;;  %v929_v25 = vadd.f32 %v921_v2, %v880_v20  ;;  %v906_v46 = vadd.f32 %v898_v15, %v890_v51  ;;  %v1160_v31 = vmul.f32 %v2382_v48, %v2309_v0  ;;  %v891_v9 = vld [vmem:[#allocation2 + $0x170] sm:$0xff]  ;;  %v874_v2 = vld [vmem:[#allocation2 + $0x61] sm:$0xff] }
 0x132   : > { %v1141_v37 = vadd.f32 %v1133_v28, %v1115_v21  ;;  %v1136_v40 = vmul.f32 %v2307_v1, %v2670_v8  ;;  %v989_v57 = vadd.f32 %v981_v23, %v963_v26  ;;  %v1007_v11 = vmul.f32 %v2301_v12, %v2446_v16  ;;  %v856_v12 = vld [vmem:[#allocation2 + $0xf0] sm:$0xff]  ;;  %v892_v21 = vld [vmem:[#allocation2 + $0x180] sm:$0xff] }
 0x133   : > { %v1118_v55 = vadd.f32 %v1110_v56, %v1092_v58  ;;  %1504 = vmatmul.msk.f32.gmra.mxu2 %vm392_vm0, %v936_v42  ;;  %v937_v35 = vadd.f32 %v929_v25, %v881_v54  ;;  %v864_v32 = vadd.f32 %v855_v60, %v846_v27  ;;  %v922_v20 = vadd.f32 %v914_v62, %v906_v46  ;;  %v915_v61 = vld [vmem:[#allocation2 + $0x171] sm:$0xff] }
 0x134   : > { %v1167_v59 = vadd.f32 %v1159_v7, %v1141_v37  ;;  %v1168_v17 = vadd.f32 %v1160_v31, %v2462_v14  ;;  %v1015_v45 = vadd.f32 %v1007_v11, %v989_v57  ;;  %v1033_v63 = vmul.f32 %v2314_v49, %v1023_v24  ;;  %v900_v5 = vld [vmem:[#allocation2 + $0x210] sm:$0xff]  ;;  %v849_v31 = vld [vmem:[#allocation2 + $0x80] sm:$0xff] }
 0x135   : > { %v1144_v10 = vadd.f32 %v1136_v40, %v1118_v55  ;;  %v882_v0 = vadd.f32 %v873_v43, %v864_v32  ;;  %v930_v19 = vadd.f32 %v922_v20, %v881_v54  ;;  %v907_v4 = vadd.f32 %v899_v52, %v891_v9  ;;  %v848_v26 = vld [vmem:[#allocation2 + $0x70] sm:$0xff]  ;;  %v916_v55 = vld [vmem:[#allocation2 + $0x181] sm:$0xff] }
 0x136   : > { %v1179_v34 = vadd.f32 %v2434_v41, %v1167_v59  ;;  %v1180_v47 = vadd.f32 %v2434_v41, %v1168_v17  ;;  %v1161_v28 = vmul.f32 %v2382_v48, %v2389_v39  ;;  %v1041_v6 = vadd.f32 %v1033_v63, %v1015_v45  ;;  %v1101_v39 = vld [vmem:[#allocation3 + $0x80] sm:$0xff]  ;;  %v1127_v23 = vld [vmem:[#allocation3 + $0x110] sm:$0xff] }
 0x137   : > { %v938_v56 = vadd.f32 %v930_v19, %v882_v0  ;;  %v865_v14 = vadd.f32 %v856_v12, %v847_v3  ;;  %v923_v42 = vadd.f32 %v915_v61, %v907_v4  ;;  %v2671_v49 = vmax.f32 %v2279_v18, 0.0  ;;  %v857_v18 = vld [vmem:[#allocation2 + $0x100] sm:$0xff]  ;;  %v875_v54 = vld [vmem:[#allocation2 + $0x71] sm:$0xff] }
 0x138   : > { %1229 = vmatmul.f32.gmra.mxu1 %v1179_v34  ;;  %v1169_v33 = vadd.f32 %v1161_v28, %v2516_v53  ;;  %v1085_v15 = vmul.f32 %v2349_v29, %v790_v38  ;;  %v908_v7 = vadd.f32 %v900_v5, %v892_v21  ;;  %v1162_v8 = vmul.f32 %v2382_v48, %v2446_v16  ;;  %v893_v25 = vld [vmem:[#allocation2 + $0x190] sm:$0xff]  ;;  %v901_v59 = vld [vmem:[#allocation2 + $0x220] sm:$0xff] }
 0x139   : > { %v1059_v30 = vmul.f32 %v2303_v22, %v2671_v49  ;;  %v883_v58 = vadd.f32 %v874_v2, %v865_v14  ;;  %v931_v37 = vadd.f32 %v923_v42, %v882_v0  ;;  %v1111_v40 = vmul.f32 %v2360_v13, %v1101_v39  ;;  %v858_v57 = vld [vmem:[#allocation2 + $0x110] sm:$0xff]  ;;  %v876_v43 = vld [vmem:[#allocation2 + $0x81] sm:$0xff] }
 0x13a   : > { %v1181_v22 = vadd.f32 %v2434_v41, %v1169_v33  ;;  %v866_v29 = vadd.f32 %v857_v18, %v848_v26  ;;  %v924_v38 = vadd.f32 %v916_v55, %v908_v7  ;;  %v1170_v46 = vadd.f32 %v1162_v8, %v1144_v10  ;;  %v917_v13 = vld [vmem:[#allocation2 + $0x191] sm:$0xff] }
 0x13b   : > { %1505 = vmatmul.msk.f32.gmra.mxu2 %vm392_vm0, %v937_v35  ;;  %v1067_v51 = vadd.f32 %v1059_v30, %v1041_v6  ;;  %v939_v50 = vadd.f32 %v931_v37, %v883_v58  ;;  %v909_v34 = vadd.f32 %v901_v59, %v893_v25  ;;  %v1137_v16 = vmul.f32 %v2307_v1, %v1127_v23 }
 0x13c   : > { %v884_v60 = vadd.f32 %v875_v54, %v866_v29  ;;  %v932_v62 = vadd.f32 %v924_v38, %v883_v58  ;;  %v1182_v11 = vadd.f32 %v2434_v41, %v1170_v46  ;;  %v1163_v35 = vmul.f32 %v2382_v48, %v806_v44  ;;  %v1632_v48 = vld [vmem:[%s2637_s6] ss:$0 sm:$0xff] }
 0x13d   : > { %v1093_v53 = vadd.f32 %v1085_v15, %v1067_v51  ;;  %v867_v10 = vadd.f32 %v858_v57, %v849_v31  ;;  %v925_v20 = vadd.f32 %v917_v13, %v909_v34 }
 0x13e   : > { %v940_v32 = vadd.f32 %v932_v62, %v884_v60 }
 0x13f   : > { %v1119_v27 = vadd.f32 %v1111_v40, %v1093_v53  ;;  %v885_v1 = vadd.f32 %v876_v43, %v867_v10  ;;  %v933_v52 = vadd.f32 %v925_v20, %v884_v60 }
 0x140   : > { %1232 = vmatmul.f32.gmra.mxu1 %v1180_v47 }
 0x141   : > { %v1145_v24 = vadd.f32 %v1137_v16, %v1119_v27  ;;  %v941_v45 = vadd.f32 %v933_v52, %v885_v1 }
 0x143   : > { %1506 = vmatmul.msk.f32.gmra.mxu2 %vm392_vm0, %v938_v56  ;;  %v1171_v9 = vadd.f32 %v1163_v35, %v1145_v24 }
 0x145   : > { %v1183_v17 = vadd.f32 %v2434_v41, %v1171_v9 }
 0x148   : > { %1235 = vmatmul.f32.gmra.mxu1 %v1181_v22 }
 0x14b   : > { %1507 = vmatmul.msk.f32.gmra.mxu2 %vm392_vm0, %v939_v50 }
 0x150   : > { %1238 = vmatmul.f32.gmra.mxu1 %v1182_v11 }
 0x153   : > { %1508 = vmatmul.msk.f32.gmra.mxu2 %vm392_vm0, %v940_v32 }
 0x158   : > { %1241 = vmatmul.f32.gmra.mxu1 %v1183_v17 }
 0x15b   : > { %1509 = vmatmul.msk.f32.gmra.mxu2 %vm392_vm0, %v941_v45 }
 0x18e   : > { %v1286_v44 = vpop.f32.mrf.mxu2 }
 0x19c   : > { %v1221_v36 = vpop.f32.mrf.mxu1 }
 0x19d   : > { %v1222_v63 = vadd.f32 %v1632_v48, %v1221_v36 }
 0x19f   : > { %v1287_v0 = vadd.f32 %v1286_v44, %v1222_v63 }
 0x1a1   : > { %v1310_v19 = vmax.f32 %v1287_v0, 0.0 }
 0x1a3   : > { %1318 = vst [vmem:[%s2587_s21] sm:$0xff] %v1310_v19 }
 0x1a4   : > { %v1224_v41 = vpop.f32.mrf.mxu1 }
 0x1a5   : > { %v1225_v4 = vadd.f32 %v1632_v48, %v1224_v41 }
 0x1ad   : > { %v1227_v3 = vpop.f32.mrf.mxu1 }
 0x1ae   : > { %v1289_v12 = vpop.f32.mrf.mxu2  ;;  %v1228_v28 = vadd.f32 %v1632_v48, %v1227_v3 }
 0x1af   : > { %v1290_v61 = vadd.f32 %v1289_v12, %v1225_v4 }
 0x1b1   : > { %v1311_v47 = vmax.f32 %v1290_v61, 0.0 }
 0x1b3   : > { %1319 = vst [vmem:[%s2587_s21 + $0x8] sm:$0xff] %v1311_v47 }
 0x1b5   : > { %v1230_v6 = vpop.f32.mrf.mxu1 }
 0x1b6   : > { %v1292_v56 = vpop.f32.mrf.mxu2  ;;  %v1231_v49 = vadd.f32 %v1632_v48, %v1230_v6 }
 0x1b7   : > { %v1293_v14 = vadd.f32 %v1292_v56, %v1228_v28 }
 0x1b9   : > { %v1312_v42 = vmax.f32 %v1293_v14, 0.0 }
 0x1bb   : > { %1320 = vst [vmem:[%s2587_s21 + $0x10] sm:$0xff] %v1312_v42 }
 0x1bd   : > { %v1233_v30 = vpop.f32.mrf.mxu1 }
 0x1be   : > { %v1295_v2 = vpop.f32.mrf.mxu2  ;;  %v1234_v33 = vadd.f32 %v1632_v48, %v1233_v30 }
 0x1bf   : > { %v1296_v21 = vadd.f32 %v1295_v2, %v1231_v49 }
 0x1c1   : > { %v1313_v5 = vmax.f32 %v1296_v21, 0.0 }
 0x1c3   : > { %1321 = vst [vmem:[%s2587_s21 + $0x18] sm:$0xff] %v1313_v5 }
 0x1c5   : > { %v1236_v51 = vpop.f32.mrf.mxu1 }
 0x1c6   : > { %v1298_v15 = vpop.f32.mrf.mxu2  ;;  %v1237_v37 = vadd.f32 %v1632_v48, %v1236_v51 }
 0x1c7   : > { %v1299_v39 = vadd.f32 %v1298_v15, %v1234_v33 }
 0x1c9   : > { %v1314_v58 = vmax.f32 %v1299_v39, 0.0 }
 0x1cb   : > { %1322 = vst [vmem:[%s2587_s21 + $0x20] sm:$0xff] %v1314_v58 }
 0x1cd   : > { %v1239_v26 = vpop.f32.mrf.mxu1 }
 0x1ce   : > { %v1301_v7 = vpop.f32.mrf.mxu2  ;;  %v1240_v22 = vadd.f32 %v1632_v48, %v1239_v26 }
 0x1cf   : > { %v1302_v18 = vadd.f32 %v1301_v7, %v1237_v37 }
 0x1d1   : > { %v1315_v55 = vmax.f32 %v1302_v18, 0.0 }
 0x1d3   : > { %1323 = vst [vmem:[%s2587_s21 + $0x28] sm:$0xff] %v1315_v55 }
 0x1d5   : > { %v1242_v40 = vpop.f32.mrf.mxu1 }
 0x1d6   : > { %v1304_v8 = vpop.f32.mrf.mxu2  ;;  %v1243_v29 = vadd.f32 %v1632_v48, %v1242_v40 }
 0x1d7   : > { %v1305_v53 = vadd.f32 %v1304_v8, %v1240_v22 }
 0x1d9   : > { %v1316_v50 = vmax.f32 %v1305_v53, 0.0 }
 0x1db   : > { %1324 = vst [vmem:[%s2587_s21 + $0x30] sm:$0xff] %v1316_v50 }
 0x1de   : > { %v1307_v38 = vpop.f32.mrf.mxu2 }
 0x1df   : > { %v1308_v23 = vadd.f32 %v1307_v38, %v1243_v29 }
 0x1e1   : > { %v1317_v54 = vmax.f32 %v1308_v23, 0.0 }
 0x1e3   : > { %1325 = vst [vmem:[%s2587_s21 + $0x38] sm:$0xff] %v1317_v54 }
 0x1e4   : > { %1810 = shalt.err (!%p1807_p10)
}
 0x1e5   : > { %s1866_s18 = smov 128   ;;  %s1867_s21 = smov 8  }
 0x1e6   : > { %1547 = dma.vmem_to_hbm [thread:$0]  (%p2009_p3), %s1340_s3, 1024, %s1342_s17, %s1327_s11, %s1866_s18, %s1866_s18, %s1867_s21  }
 0x1e7 PF: > { %s1356_s25 = sand.u32 1, %s1845_s27   ;;  %p2672_p12 = scmp.ge.s32.totalorder %s1857_s30, 2 }
 0x1e8   : > { %s1357_s19 = scalar_lea.sflag [#allocation6], %s1356_s25 }
 0x1e9   : > { %p1567_p13 = pnand %p2672_p12, %p1948_p6 }
 0x1eb   : > { %p1568_p0 = pneg %p1567_p13 }
 0x1ed   : > { %1840 = dma.done.wait (%p1568_p0), %s1357_s19, 1024  }
 0x1ee   : > { %1842 = vsyncadd (%p1568_p0), %s1357_s19, 4294966272  ;;  %p23_p5 = scmp.ge.s32.totalorder %s1999_s26, 4   ;;  %s2673_s27 = smov %s1849_s28 }
 0x1ef   : > { %s2674_s28 = smov %s1853_s29  ;;  %s2675_s29 = smov %s2015_s15 }
 0x1f0   : > { %s2676_s30 = smov %s1999_s26  ;;  %25 = sbr.rel (!%p23_p5) target bundleno = 10 (0xa), region = 127 }
 0x1f5   :  { %1363 = vsyncpa [#allocation5], 1 }
 0x1f6   :  { %1365 = vsyncpa [#allocation5 + $0x1], 1 }
 0x1f7   :  { %1366 = vsyncpa [#allocation8], 1 }
 0x1f8   :  { %1367 = vsyncpa [#allocation11], 1 }
 0x1f9   :  { %1368 = vsyncpa [#allocation6], 1 }
 0x1fa   :  { %1370 = vsyncpa [#allocation6 + $0x1], 1 }

</bundles_post_ra>
